<compile_context>
chip_gen: v5e
topology: v5e:2x2
jax: 0.10.0
libtpu: 0.0.40
codegen_flags: <defaults>
</compile_context>

<pallas_src>
import functools

import jax
import jax.numpy as jnp
from jax import lax
from jax.experimental import pallas as pl
from jax.experimental.pallas import tpu as pltpu


def _bn_relu_kernel(x_ref, gamma_ref, beta_ref, o_ref, *, reduce_size, eps):
    # x_ref: (Cblk, HW) f32, gamma_ref/beta_ref: (Cblk, 1) f32, o_ref: (Cblk, HW) f32
    inv_m = jnp.float32(1.0 / reduce_size)

    # First read: single-sweep moments.  `x` is only live during the two lane
    # reduces, so the big tile never spans the rsqrt/scale computation.
    x = x_ref[...]
    s = jnp.sum(x, axis=-1, keepdims=True)          # (Cblk, 1)
    ss = jnp.sum(x * x, axis=-1, keepdims=True)     # (Cblk, 1)

    mean = s * inv_m
    var = ss * inv_m - mean * mean                  # biased var, like torch train-mode BN
    inv_std = lax.rsqrt(var + jnp.float32(eps))
    scale = gamma_ref[...] * inv_std                # (Cblk, 1)
    shift = beta_ref[...] - mean * scale            # (Cblk, 1)

    # Second read: single normalize pass, FMA + ReLU (re-load beats spilling).
    y = x_ref[...] * scale + shift
    o_ref[...] = jnp.maximum(y, jnp.float32(0.0)).astype(o_ref.dtype)


def batchnorm_relu(x_nchw, gamma, beta, eps=1e-5):
    """x_nchw: (N, C, H, W) float32. Returns (N, C, H, W) float32."""
    n, c, h, w = x_nchw.shape
    hw = n * h * w  # per-channel reduce size (N folded into the lane axis)

    if n == 1:
        x2d = x_nchw.reshape(c, hw)  # free view: contiguous NCHW with N == 1
    else:
        # TODO(synk): for N > 1 this transpose is a real HBM pass; the spec shape is N == 1.
        x2d = jnp.transpose(x_nchw, (1, 0, 2, 3)).reshape(c, hw)

    g = gamma.reshape(c, 1).astype(jnp.float32)
    b = beta.reshape(c, 1).astype(jnp.float32)

    kernel = functools.partial(_bn_relu_kernel, reduce_size=hw, eps=eps)
    out_shape = jax.ShapeDtypeStruct((c, hw), x_nchw.dtype)

    row_bytes = hw * x2d.dtype.itemsize
    block_budget = 2 * 1024 * 1024  # per x-block; keeps double-buffered I/O far under scoped VMEM

    if c * row_bytes <= block_budget:
        # Monolithic block (the spec shape lands here): no grid, no per-step overhead.
        out2d = pl.pallas_call(
            kernel,
            out_shape=out_shape,
            in_specs=[
                pl.BlockSpec((c, hw), lambda: (0, 0)),
                pl.BlockSpec((c, 1), lambda: (0, 0)),
                pl.BlockSpec((c, 1), lambda: (0, 0)),
            ],
            out_specs=pl.BlockSpec((c, hw), lambda: (0, 0)),
        )(x2d, g, b)
    else:
        # Scaling guard: channel-tiled grid.  Per-channel stats are
        # self-contained per block, so no cross-block combine is needed;
        # "parallel" lets megacore chips (v7x) split the channel blocks.
        c_block = max(8, min(c, block_budget // row_bytes) // 8 * 8)
        out2d = pl.pallas_call(
            kernel,
            out_shape=out_shape,
            grid=(pl.cdiv(c, c_block),),
            in_specs=[
                pl.BlockSpec((c_block, hw), lambda i: (i, 0)),
                pl.BlockSpec((c_block, 1), lambda i: (i, 0)),
                pl.BlockSpec((c_block, 1), lambda i: (i, 0)),
            ],
            out_specs=pl.BlockSpec((c_block, hw), lambda i: (i, 0)),
            compiler_params=pltpu.CompilerParams(
                dimension_semantics=("parallel",),
                vmem_limit_bytes=32 * 1024 * 1024,
            ),
        )(x2d, g, b)

    if n == 1:
        return out2d.reshape(n, c, h, w)
    return jnp.transpose(out2d.reshape(c, n, h, w), (1, 0, 2, 3))


def _reference(x_nchw, gamma, beta, eps=1e-5):
    mean = jnp.mean(x_nchw, axis=(0, 2, 3), keepdims=True)
    var = jnp.mean((x_nchw - mean) ** 2, axis=(0, 2, 3), keepdims=True)
    y = (x_nchw - mean) / jnp.sqrt(var + eps)
    y = y * gamma.reshape(1, -1, 1, 1) + beta.reshape(1, -1, 1, 1)
    return jnp.maximum(y, 0.0)


if __name__ == "__main__":
    key = jax.random.PRNGKey(0)
    kx, kg, kb = jax.random.split(key, 3)

    N, C, H, W = 1, 120, 28, 28  # BatchNorm2d(120) fixes C=120; spec input shape
    x = jax.random.normal(kx, (N, C, H, W), dtype=jnp.float32)
    gamma = 1.0 + 0.1 * jax.random.normal(kg, (C,), dtype=jnp.float32)
    beta = 0.1 * jax.random.normal(kb, (C,), dtype=jnp.float32)

    out = jax.block_until_ready(batchnorm_relu(x, gamma, beta))

    ref = _reference(x, gamma, beta)
    assert out.shape == (N, C, H, W)
    assert jnp.allclose(out, ref, atol=1e-4, rtol=1e-4)
    print("KERNEL_OK")
</pallas_src>

<mosaic_0001>
module attributes {stable_mosaic.version = 11 : i64} {
  func.func @_bn_relu_kernel(%arg0: memref<120x784xf32, #tpu.memory_space<vmem>>, %arg1: memref<120x1xf32, #tpu.memory_space<vmem>>, %arg2: memref<120x1xf32, #tpu.memory_space<vmem>>, %arg3: memref<120x784xf32, #tpu.memory_space<vmem>>) attributes {dimension_semantics = [], scalar_prefetch = 0 : i64, scratch_operands = 0 : i64, tpu.core_type = #tpu.core_type<tc>} {
    %c0 = arith.constant 0 : index
    %c0_0 = arith.constant 0 : index
    %0 = vector.load %arg0[%c0, %c0_0] : memref<120x784xf32, #tpu.memory_space<vmem>>, vector<120x784xf32>
    %cst = arith.constant dense<0.000000e+00> : vector<120xf32>
    %1 = vector.multi_reduction <add>, %0, %cst [1] : vector<120x784xf32> to vector<120xf32>
    %2 = vector.shape_cast %1 : vector<120xf32> to vector<120x1xf32>
    %3 = arith.mulf %0, %0 : vector<120x784xf32>
    %cst_1 = arith.constant dense<0.000000e+00> : vector<120xf32>
    %4 = vector.multi_reduction <add>, %3, %cst_1 [1] : vector<120x784xf32> to vector<120xf32>
    %5 = vector.shape_cast %4 : vector<120xf32> to vector<120x1xf32>
    %cst_2 = arith.constant 0.00127551018 : f32
    %6 = vector.broadcast %cst_2 : f32 to vector<120x1xf32>
    %7 = arith.mulf %2, %6 : vector<120x1xf32>
    %cst_3 = arith.constant 0.00127551018 : f32
    %8 = vector.broadcast %cst_3 : f32 to vector<120x1xf32>
    %9 = arith.mulf %5, %8 : vector<120x1xf32>
    %10 = arith.mulf %7, %7 : vector<120x1xf32>
    %11 = arith.subf %9, %10 : vector<120x1xf32>
    %cst_4 = arith.constant 9.99999974E-6 : f32
    %12 = vector.broadcast %cst_4 : f32 to vector<120x1xf32>
    %13 = arith.addf %11, %12 : vector<120x1xf32>
    %14 = math.rsqrt %13 : vector<120x1xf32>
    %c0_5 = arith.constant 0 : index
    %c0_6 = arith.constant 0 : index
    %15 = vector.load %arg1[%c0_5, %c0_6] : memref<120x1xf32, #tpu.memory_space<vmem>>, vector<120x1xf32>
    %16 = arith.mulf %15, %14 : vector<120x1xf32>
    %c0_7 = arith.constant 0 : index
    %c0_8 = arith.constant 0 : index
    %17 = vector.load %arg2[%c0_7, %c0_8] : memref<120x1xf32, #tpu.memory_space<vmem>>, vector<120x1xf32>
    %18 = arith.mulf %7, %16 : vector<120x1xf32>
    %19 = arith.subf %17, %18 : vector<120x1xf32>
    %c0_9 = arith.constant 0 : index
    %c0_10 = arith.constant 0 : index
    %20 = vector.load %arg0[%c0_9, %c0_10] : memref<120x784xf32, #tpu.memory_space<vmem>>, vector<120x784xf32>
    %21 = vector.broadcast %16 : vector<120x1xf32> to vector<120x784xf32>
    %22 = arith.mulf %20, %21 : vector<120x784xf32>
    %23 = vector.broadcast %19 : vector<120x1xf32> to vector<120x784xf32>
    %24 = arith.addf %22, %23 : vector<120x784xf32>
    %cst_11 = arith.constant 0.000000e+00 : f32
    %25 = vector.broadcast %cst_11 : f32 to vector<120x784xf32>
    %26 = arith.maximumf %24, %25 : vector<120x784xf32>
    %c0_12 = arith.constant 0 : index
    %c0_13 = arith.constant 0 : index
    %27 = vector.load %arg3[%c0_12, %c0_13] : memref<120x784xf32, #tpu.memory_space<vmem>>, vector<120x784xf32>
    tpu.vector_store %arg3[%c0_12, %c0_13], %26 {strides = array<i32>} : memref<120x784xf32, #tpu.memory_space<vmem>>, vector<120x784xf32>,
    return
  }
}

</mosaic_0001>

<bundles_post_ra>
// kernel: tpu_custom_call.1
= control target key start
LH: loop header
LB: loop body
LE: loop exit
PB: predicated region body
PF: predicated region fallthrough
CT: control target
= control target key end

     0   :  { %vm124_vm0 = vcmask 130048   ;;  %s3570_s0 = inlined_call_operand.vmem [shape: f32[120,784], index: 0, kind: input, shape index: {}]   ;;  %s3571_s1 = inlined_call_operand.vmem [shape: f32[120,1], index: 1, kind: input, shape index: {}]   ;;  %s3572_s2 = inlined_call_operand.vmem [shape: f32[120,1], index: 2, kind: input, shape index: {}]   ;;  %s3573_s3 = inlined_call_operand.vmem [shape: f32[120,784], index: 3, kind: output, shape index: {}]  }
   0x1   :  { %v1532_v0 = vld [vmem:[%s3570_s0 + $0xe0] sm:$0xff]  ;;  %v1537_v1 = vld [vmem:[%s3570_s0 + $0xe8] sm:$0xff]  ;;  %v1542_v2 = vld [vmem:[%s3570_s0 + $0xf0] sm:$0xff] }
   0x2   :  { %v156_v3 = vadd.f32 %v1537_v1, %v1532_v0  ;;  %v1549_v4 = vld [vmem:[%s3570_s0 + $0xf8] sm:$0xff]  ;;  %v28_v5 = vld [vmem:[%s3570_s0 + $0x70] sm:$0xff]  ;;  %v1560_v7 = vld [vmem:[%s3570_s0 + $0x100] sm:$0xff] }
   0x3   :  { %v29_v6 = vld [vmem:[%s3570_s0 + $0x78] sm:$0xff]  ;;  %v1566_v9 = vld [vmem:[%s3570_s0 + $0x80] sm:$0xff]  ;;  %v1571_v11 = vld [vmem:[%s3570_s0 + $0x108] sm:$0xff] }
   0x4   :  { %v157_v8 = vadd.f32 %v156_v3, %v1542_v2  ;;  %v138_v10 = vadd.f32 %v29_v6, %v28_v5  ;;  %v1576_v12 = vld [vmem:[%s3570_s0 + $0x88] sm:$0xff]  ;;  %v1581_v13 = vld [vmem:[%s3570_s0] sm:$0xff]  ;;  %v1586_v14 = vld [vmem:[%s3570_s0 + $0x110] sm:$0xff]  ;;  %v269_v3 = vmul.f32 %v28_v5, %v28_v5 }
   0x5   :  { %v1593_v17 = vld [vmem:[%s3570_s0 + $0x8] sm:$0xff]  ;;  %v1598_v18 = vld [vmem:[%s3570_s0 + $0x10] sm:$0xff]  ;;  %v1608_v20 = vld [vmem:[%s3570_s0 + $0xa0] sm:$0xff]  ;;  %v161_v28 = vsel %vm124_vm0, %v1586_v14, 0.0 }
   0x6   :  { %v158_v15 = vadd.f32 %v157_v8, %v1549_v4  ;;  %v139_v16 = vadd.f32 %v138_v10, %v1566_v9  ;;  %v1603_v19 = vld [vmem:[%s3570_s0 + $0x90] sm:$0xff]  ;;  %v1613_v21 = vld [vmem:[%s3570_s0 + $0x18] sm:$0xff]  ;;  %v119_v22 = vadd.f32 %v1593_v17, %v1581_v13  ;;  %v1627_v26 = vld [vmem:[%s3570_s0 + $0x120] sm:$0xff]  ;;  %v143_v39 = vsel %vm124_vm0, %v1608_v20, 0.0 }
   0x7   :  { %v1622_v25 = vld [vmem:[%s3570_s0 + $0x118] sm:$0xff]  ;;  %v1632_v27 = vld [vmem:[%s3570_s0 + $0x128] sm:$0xff]  ;;  %v1644_v30 = vld [vmem:[%s3570_s0 + $0x20] sm:$0xff]  ;;  %v270_v8 = vmul.f32 %v29_v6, %v29_v6 }
   0x8   :  { %v159_v23 = vadd.f32 %v158_v15, %v1560_v7  ;;  %v140_v24 = vadd.f32 %v139_v16, %v1576_v12  ;;  %v1639_v29 = vld [vmem:[%s3570_s0 + $0x98] sm:$0xff]  ;;  %v1649_v31 = vld [vmem:[%s3570_s0 + $0x30] sm:$0xff]  ;;  %v120_v32 = vadd.f32 %v119_v22, %v1598_v18  ;;  %v165_v33 = vadd.f32 %v1627_v26, %v1622_v25  ;;  %v1664_v37 = vld [vmem:[%s3570_s0 + $0xa8] sm:$0xff] }
   0x9   :  { %v1659_v36 = vld [vmem:[%s3570_s0 + $0x130] sm:$0xff]  ;;  %v1676_v40 = vld [vmem:[%s3570_s0 + $0x28] sm:$0xff]  ;;  %v1682_v42 = vld [vmem:[%s3570_s0 + $0x138] sm:$0xff]  ;;  %v125_v53 = vsel %vm124_vm0, %v1649_v31, 0.0 }
   0xa   :  { %v160_v34 = vadd.f32 %v159_v23, %v1571_v11  ;;  %v141_v35 = vadd.f32 %v140_v24, %v1603_v19  ;;  %v1669_v38 = vld [vmem:[%s3570_s0 + $0xb0] sm:$0xff]  ;;  %v121_v41 = vadd.f32 %v120_v32, %v1613_v21  ;;  %v166_v43 = vadd.f32 %v165_v33, %v1632_v27  ;;  %v1688_v44 = vld [vmem:[%s3570_s0 + $0xb8] sm:$0xff]  ;;  %v1696_v48 = vld [vmem:[%s3570_s0 + $0x140] sm:$0xff] }
   0xb   :  { %v147_v45 = vadd.f32 %v1669_v38, %v1664_v37  ;;  %v1701_v49 = vld [vmem:[%s3570_s0 + $0x148] sm:$0xff]  ;;  %v1706_v50 = vld [vmem:[%s3570_s0 + $0xc0] sm:$0xff]  ;;  %v1711_v51 = vld [vmem:[%s3570_s0 + $0x38] sm:$0xff] }
   0xc   :  { %v162_v46 = vadd.f32 %v161_v28, %v160_v34  ;;  %v142_v47 = vadd.f32 %v141_v35, %v1639_v29  ;;  %v122_v52 = vadd.f32 %v121_v41, %v1644_v30  ;;  %v167_v54 = vadd.f32 %v166_v43, %v1659_v36  ;;  %v1720_v55 = vld [vmem:[%s3570_s0 + $0xc8] sm:$0xff]  ;;  %v1726_v57 = vld [vmem:[%s3570_s0 + $0x40] sm:$0xff]  ;;  %v1736_v60 = vld [vmem:[%s3570_s0 + $0xd0] sm:$0xff] }
   0xd   :  { %3623 = vst [vmem:[#allocation2_spill] sm:$0xff] %v1720_v55  ;;  %v148_v56 = vadd.f32 %v147_v45, %v1688_v44  ;;  %v1731_v58 = vld [vmem:[%s3570_s0 + $0x48] sm:$0xff]  ;;  %v1741_v61 = vld [vmem:[%s3570_s0 + $0xd8] sm:$0xff]  ;;  %v1746_v62 = vld [vmem:[%s3570_s0 + $0x50] sm:$0xff]  ;;  %v129_v63 = vadd.f32 %v1726_v57, %v1711_v51  ;;  %v170_v6 = vsel %vm124_vm0, %v1701_v49, 0.0  ;;  %v271_v35 = vmul.f32 %v1566_v9, %v1566_v9 }
   0xe   :  { %163 = vadd.xlane.f32.xlu2 %v162_v46  ;;  %v144_v59 = vadd.f32 %v143_v39, %v142_v47  ;;  %3624 = vst [vmem:[#allocation3_spill] sm:$0xff] %v1736_v60  ;;  %v123_v10 = vadd.f32 %v122_v52, %v1676_v40  ;;  %v168_v15 = vadd.f32 %v167_v54, %v1682_v42  ;;  %v1756_v22 = vld [vmem:[%s3570_s0 + $0x1c0] sm:$0xff]  ;;  %v1761_v23 = vld [vmem:[%s3570_s0 + $0x1c8] sm:$0xff]  ;;  %v1766_v5 = vld [vmem:[%s3570_s0 + $0x1d0] sm:$0xff]  ;;  %v152_v52 = vsel %vm124_vm0, %v1741_v61, 0.0 }
   0xf   :  { %v149_v16 = vadd.f32 %v148_v56, %v1706_v50  ;;  %3625 = vst [vmem:[#allocation4_spill] sm:$0xff] %v1756_v22  ;;  %v1773_v24 = vld [vmem:[%s3570_s0 + $0x58] sm:$0xff]  ;;  %v1778_v28 = vld [vmem:[%s3570_s0 + $0x68] sm:$0xff]  ;;  %v130_v32 = vadd.f32 %v129_v63, %v1731_v58  ;;  %v192_v34 = vadd.f32 %v1761_v23, %v1756_v22  ;;  %v1795_v45 = vld [vmem:[%s3570_s0 + $0x1f0] sm:$0xff]  ;;  %v378_v9 = vadd.f32 %v270_v8, %v269_v3 }
  0x10   :  { %3626 = vst [vmem:[#allocation5_spill] sm:$0xff] %v1761_v23  ;;  %145 = vadd.xlane.f32.xlu1 %v144_v59  ;;  %v1784_v33 = vld [vmem:[%s3570_s0 + $0x1d8] sm:$0xff]  ;;  %v126_v39 = vadd.f32 %v125_v53, %v123_v10  ;;  %v169_v41 = vadd.f32 %v168_v15, %v1696_v48  ;;  %v1800_v46 = vld [vmem:[%s3570_s0 + $0x188] sm:$0xff]  ;;  %v1805_v47 = vld [vmem:[%s3570_s0 + $0x190] sm:$0xff]  ;;  %v134_v15 = vsel %vm124_vm0, %v1778_v28, 0.0 }
  0x11   :  { %3627 = vst [vmem:[#allocation6_spill] sm:$0xff] %v1766_v5  ;;  %v150_v43 = vadd.f32 %v149_v16, %v1720_v55  ;;  %v1812_v53 = vld [vmem:[%s3570_s0 + $0x60] sm:$0xff]  ;;  %v131_v54 = vadd.f32 %v130_v32, %v1746_v62  ;;  %v193_v59 = vadd.f32 %v192_v34, %v1766_v5  ;;  %v1824_v63 = vld [vmem:[%s3570_s0 + $0x198] sm:$0xff]  ;;  %v183_v3 = vadd.f32 %v1805_v47, %v1800_v46  ;;  %v1834_v16 = vld [vmem:[%s3570_s0 + $0x1e8] sm:$0xff] }
  0x12   :  { %3628 = vst [vmem:[#allocation7_spill] sm:$0xff] %v1784_v33  ;;  %v1818_v56 = vld [vmem:[%s3570_s0 + $0x1e0] sm:$0xff]  ;;  %127 = vadd.xlane.f32.xlu0 %v126_v39  ;;  %v171_v8 = vadd.f32 %v170_v6, %v169_v41  ;;  %v1844_v34 = vld [vmem:[%s3570_s0 + $0x150] sm:$0xff]  ;;  %v272_v6 = vmul.f32 %v1576_v12, %v1576_v12  ;;  %v1893_v23 = vld [vmem:[%s3570_s0 + $0x268] sm:$0xff] }
  0x13   :  { %3629 = vst [vmem:[#allocation8_spill] sm:$0xff] %v1795_v45  ;;  %v151_v10 = vadd.f32 %v150_v43, %v1736_v60  ;;  %v1839_v32 = vld [vmem:[%s3570_s0 + $0x1a0] sm:$0xff]  ;;  %v132_v39 = vadd.f32 %v131_v54, %v1773_v24  ;;  %v194_v41 = vadd.f32 %v193_v59, %v1784_v33  ;;  %v197_v43 = vsel %vm124_vm0, %v1795_v45, 0.0  ;;  %v1861_v60 = vld [vmem:[%s3570_s0 + $0x158] sm:$0xff] }
  0x14   :  { %3630 = vst [vmem:[#allocation9_spill] sm:$0xff] %v1800_v46  ;;  %v184_v46 = vadd.f32 %v183_v3, %v1824_v63  ;;  %v1866_v12 = vld [vmem:[%s3570_s0 + $0x160] sm:$0xff]  ;;  %v1871_v59 = vld [vmem:[%s3570_s0 + $0x1b8] sm:$0xff]  ;;  %v1876_v3 = vld [vmem:[%s3570_s0 + $0x168] sm:$0xff]  ;;  %v174_v45 = vadd.f32 %v1861_v60, %v1844_v34 }
  0x15   :  { %3631 = vst [vmem:[#allocation10_spill] sm:$0xff] %v1805_v47  ;;  %v1855_v47 = vld [vmem:[%s3570_s0 + $0x1a8] sm:$0xff]  ;;  %v153_v54 = vadd.f32 %v152_v52, %v151_v10  ;;  %v273_v52 = vmul.f32 %v1603_v19, %v1603_v19  ;;  %v379_v10 = vadd.f32 %v378_v9, %v271_v35  ;;  %v133_v33 = vadd.f32 %v132_v39, %v1812_v53  ;;  %v1903_v19 = vld [vmem:[%s3570_s0 + $0x278] sm:$0xff]  ;;  %v1915_v9 = vld [vmem:[%s3570_s0 + $0x170] sm:$0xff] }
  0x16   :  { %3632 = vst [vmem:[#allocation11_spill] sm:$0xff] %v1818_v56  ;;  %172 = vadd.xlane.f32.xlu2 %v171_v8  ;;  %v195_v5 = vadd.f32 %v194_v41, %v1818_v56  ;;  %v185_v55 = vadd.f32 %v184_v46, %v1839_v32  ;;  %v275_v35 = vmul.f32 %v1608_v20, %v1608_v20  ;;  %v1910_v46 = vld [vmem:[%s3570_s0 + $0x1b0] sm:$0xff]  ;;  %v188_v22 = vsel %vm124_vm0, %v1871_v59, 0.0 }
  0x17   :  { %3633 = vst [vmem:[#allocation12_spill] sm:$0xff] %v1824_v63  ;;  %v1881_v63 = vld [vmem:[%s3570_s0 + $0x180] sm:$0xff]  ;;  %v175_v8 = vadd.f32 %v174_v45, %v1866_v12  ;;  %v274_v41 = vmul.f32 %v1639_v29, %v1639_v29  ;;  %v135_v20 = vadd.f32 %v134_v15, %v133_v33  ;;  %v1929_v45 = vld [vmem:[%s3570_s0 + $0x178] sm:$0xff]  ;;  %v1939_v29 = vld [vmem:[%s3570_s0 + $0x230] sm:$0xff] }
  0x18   :  { %3634 = vst [vmem:[#allocation13_spill] sm:$0xff] %v1839_v32  ;;  %154 = vadd.xlane.f32.xlu1 %v153_v54  ;;  %v196_v32 = vadd.f32 %v195_v5, %v1834_v16  ;;  %v186_v56 = vadd.f32 %v185_v55, %v1855_v47  ;;  %v1944_v55 = vld [vmem:[%s3570_s0 + $0x238] sm:$0xff]  ;;  %v179_v33 = vsel %vm124_vm0, %v1881_v63, 0.0  ;;  %v1952_v15 = vld [vmem:[%s3570_s0 + $0x288] sm:$0xff] }
  0x19   :  { %3635 = vst [vmem:[#allocation14_spill] sm:$0xff] %v1844_v34  ;;  %v380_v34 = vadd.f32 %v379_v10, %v272_v6  ;;  %v176_v5 = vadd.f32 %v175_v8, %v1876_v3  ;;  %v1957_v6 = vld [vmem:[%s3570_s0 + $0x298] sm:$0xff]  ;;  %v1963_v10 = vld [vmem:[%s3570_s0 + $0x240] sm:$0xff]  ;;  %v210_v8 = vadd.f32 %v1944_v55, %v1939_v29 }
  0x1a   :  { %3636 = vst [vmem:[#allocation15_spill] sm:$0xff] %v1861_v60  ;;  %v1898_v60 = vld [vmem:[%s3570_s0 + $0x270] sm:$0xff]  ;;  %136 = vadd.xlane.f32.xlu0 %v135_v20  ;;  %v224_v20 = vsel %vm124_vm0, %v1957_v6, 0.0 }
  0x1b   :  { %3637 = vst [vmem:[#allocation16_spill] sm:$0xff] %v1866_v12  ;;  %v219_v39 = vadd.f32 %v1898_v60, %v1893_v23  ;;  %v381_v12 = vadd.f32 %v380_v34, %v273_v52  ;;  %v2000_v34 = vld [vmem:[%s3570_s0 + $0x208] sm:$0xff]  ;;  %v262_v52 = vmul.f32 %v1711_v51, %v1711_v51 }
  0x1c   :  { %3638 = vst [vmem:[#allocation17_spill] sm:$0xff] %v1876_v3  ;;  %v1971_v3 = vld [vmem:[%s3570_s0 + $0x290] sm:$0xff] }
  0x1d   :  { %3639 = vst [vmem:[#allocation18_spill] sm:$0xff] %v1881_v63  ;;  %v220_v54 = vadd.f32 %v219_v39, %v1903_v19  ;;  %v198_v63 = vadd.f32 %v197_v43, %v196_v32  ;;  %v1976_v39 = vld [vmem:[%s3570_s0 + $0x248] sm:$0xff]  ;;  %v383_v32 = vsel %vm124_vm0, %v275_v35, 0.0 }
  0x1e   :  { %3640 = vst [vmem:[#allocation19_spill] sm:$0xff] %v1893_v23  ;;  %v187_v23 = vadd.f32 %v186_v56, %v1910_v46  ;;  %v177_v56 = vadd.f32 %v176_v5, %v1915_v9  ;;  %v2009_v5 = vld [vmem:[%s3570_s0 + $0x250] sm:$0xff] }
  0x1f   :  { %3641 = vst [vmem:[#allocation20_spill] sm:$0xff] %v1898_v60  ;;  %v1934_v60 = vld [vmem:[%s3570_s0 + $0x280] sm:$0xff]  ;;  %199 = vadd.xlane.f32.xlu2 %v198_v63 }
  0x20   :  { %3642 = vst [vmem:[#allocation21_spill] sm:$0xff] %v1903_v19  ;;  %v1981_v19 = vld [vmem:[%s3570_s0 + $0x1f8] sm:$0xff]  ;;  %v221_v43 = vadd.f32 %v220_v54, %v1934_v60  ;;  %v189_v35 = vadd.f32 %v188_v22, %v187_v23  ;;  %v2014_v54 = vld [vmem:[%s3570_s0 + $0x210] sm:$0xff]  ;;  %v382_v22 = vadd.f32 %v381_v12, %v274_v41  ;;  %v178_v23 = vadd.f32 %v177_v56, %v1929_v45  ;;  %v2039_v12 = vld [vmem:[%s3570_s0 + $0x320] sm:$0xff] }
  0x21   :  { %3643 = vst [vmem:[#allocation22_spill] sm:$0xff] %v1910_v46  ;;  %v1995_v46 = vld [vmem:[%s3570_s0 + $0x200] sm:$0xff]  ;;  %v263_v41 = vmul.f32 %v1726_v57, %v1726_v57  ;;  %v264_v57 = vmul.f32 %v1731_v58, %v1731_v58 }
  0x22   :  { %3644 = vst [vmem:[#allocation23_spill] sm:$0xff] %v1915_v9  ;;  %v201_v51 = vadd.f32 %v1995_v46, %v1981_v19  ;;  %v2034_v9 = vld [vmem:[%s3570_s0 + $0x318] sm:$0xff]  ;;  %v180_v63 = vadd.f32 %v179_v33, %v178_v23  ;;  %v2077_v58 = vld [vmem:[%s3570_s0 + $0x2e0] sm:$0xff]  ;;  %190 = vadd.xlane.f32.xlu1 %v189_v35 }
  0x23   :  { %3645 = vst [vmem:[#allocation24_spill] sm:$0xff] %v1929_v45  ;;  %v2067_v45 = vld [vmem:[%s3570_s0 + $0x328] sm:$0xff]  ;;  %v2082_v33 = vld [vmem:[%s3570_s0 + $0x220] sm:$0xff] }
  0x24   :  { %3646 = vst [vmem:[#allocation25_spill] sm:$0xff] %v1934_v60  ;;  %v2029_v60 = vld [vmem:[%s3570_s0 + $0x310] sm:$0xff]  ;;  %181 = vadd.xlane.f32.xlu0 %v180_v63  ;;  %v267_v63 = vmul.f32 %v1812_v53, %v1812_v53 }
  0x25   :  { %3647 = vst [vmem:[#allocation26_spill] sm:$0xff] %v1939_v29  ;;  %v211_v29 = vadd.f32 %v210_v8, %v1963_v10  ;;  %v2019_v8 = vld [vmem:[%s3570_s0 + $0x228] sm:$0xff]  ;;  %v2172_v53 = vld [vmem:[%s3570_s0 + $0x2d0] sm:$0xff] }
  0x26   :  { %3648 = vst [vmem:[#allocation27_spill] sm:$0xff] %v1944_v55  ;;  %v1989_v55 = vld [vmem:[%s3570_s0 + $0x260] sm:$0xff] }
  0x27   :  { %3649 = vst [vmem:[#allocation28_spill] sm:$0xff] %v1952_v15  ;;  %v215_v56 = vsel %vm124_vm0, %v1989_v55, 0.0 }
  0x28   :  { %3650 = vst [vmem:[#allocation29_spill] sm:$0xff] %v1957_v6  ;;  %v212_v6 = vadd.f32 %v211_v29, %v1976_v39  ;;  %v2046_v29 = vld [vmem:[%s3570_s0 + $0x258] sm:$0xff] }
  0x29   :  { %3651 = vst [vmem:[#allocation30_spill] sm:$0xff] %v1963_v10  ;;  %v222_v10 = vadd.f32 %v221_v43, %v1952_v15  ;;  %v2053_v43 = vld [vmem:[%s3570_s0 + $0x218] sm:$0xff] }
  0x2a   :  { %3652 = vst [vmem:[#allocation31_spill] sm:$0xff] %v1976_v39  ;;  %v213_v15 = vadd.f32 %v212_v6, %v2009_v5 }
  0x2b   :  { %3653 = vst [vmem:[#allocation32_spill] sm:$0xff] %v1981_v19  ;;  %v246_v19 = vadd.f32 %v2034_v9, %v2029_v60  ;;  %v223_v39 = vadd.f32 %v222_v10, %v1971_v3  ;;  %v2088_v10 = vld [vmem:[%s3570_s0 + $0x340] sm:$0xff] }
  0x2c   :  { %3654 = vst [vmem:[#allocation33_spill] sm:$0xff] %v1989_v55  ;;  %v206_v55 = vsel %vm124_vm0, %v2019_v8, 0.0 }
  0x2d   :  { %3655 = vst [vmem:[#allocation34_spill] sm:$0xff] %v1995_v46  ;;  %v202_v46 = vadd.f32 %v201_v51, %v2000_v34  ;;  %v2072_v51 = vld [vmem:[%s3570_s0 + $0x2d8] sm:$0xff]  ;;  %v247_v23 = vadd.f32 %v246_v19, %v2039_v12  ;;  %v2109_v19 = vld [vmem:[%s3570_s0 + $0x2f0] sm:$0xff] }
  0x2e   :  { %3656 = vst [vmem:[#allocation35_spill] sm:$0xff] %v2000_v34  ;;  %v237_v35 = vadd.f32 %v2077_v58, %v2072_v51  ;;  %v2162_v34 = vld [vmem:[%s3570_s0 + $0x2b8] sm:$0xff] }
  0x2f   :  { %3657 = vst [vmem:[#allocation36_spill] sm:$0xff] %v2014_v54  ;;  %v203_v6 = vadd.f32 %v202_v46, %v2014_v54  ;;  %v214_v46 = vadd.f32 %v213_v15, %v2046_v29  ;;  %v2104_v54 = vld [vmem:[%s3570_s0 + $0x330] sm:$0xff]  ;;  %v266_v15 = vmul.f32 %v1773_v24, %v1773_v24  ;;  %v2138_v24 = vld [vmem:[%s3570_s0 + $0x338] sm:$0xff] }
  0x30   :  { %3658 = vst [vmem:[#allocation37_spill] sm:$0xff] %v2019_v8  ;;  %v225_v8 = vadd.f32 %v224_v20, %v223_v39  ;;  %v265_v39 = vmul.f32 %v1746_v62, %v1746_v62  ;;  %v248_v20 = vadd.f32 %v247_v23, %v2067_v45  ;;  %v268_v62 = vmul.f32 %v1778_v28, %v1778_v28  ;;  %v2145_v23 = vld [vmem:[%s3570_s0 + $0x2f8] sm:$0xff] }
  0x31   :  { %3659 = vst [vmem:[#allocation38_spill] sm:$0xff] %v2029_v60  ;;  %v2098_v60 = vadd.f32 %v383_v32, %v382_v22  ;;  %v204_v32 = vadd.f32 %v203_v6, %v2053_v43  ;;  %v251_v6 = vsel %vm124_vm0, %v2088_v10, 0.0 }
  0x32   :  { %3660 = vst [vmem:[#allocation39_spill] sm:$0xff] %v2034_v9  ;;  %v2094_v9 = vld [vmem:[%s3570_s0 + $0x2e8] sm:$0xff]  ;;  %226 = vadd.xlane.f32.xlu2 %v225_v8 }
  0x33   :  { %3661 = vst [vmem:[#allocation40_spill] sm:$0xff] %v2039_v12  ;;  %v2114_v12 = vld [vmem:[%s3570_s0 + $0x2a0] sm:$0xff]  ;;  %v238_v22 = vadd.f32 %v237_v35, %v2094_v9  ;;  %v2150_v35 = vld [vmem:[%s3570_s0 + $0x308] sm:$0xff] }
  0x34   :  { %3662 = vst [vmem:[#allocation41_spill] sm:$0xff] %v2046_v29 }
  0x35   :  { %3663 = vst [vmem:[#allocation42_spill] sm:$0xff] %v2053_v43  ;;  %v249_v43 = vadd.f32 %v248_v20, %v2104_v54  ;;  %v239_v29 = vadd.f32 %v238_v22, %v2109_v19  ;;  %v242_v22 = vsel %vm124_vm0, %v2150_v35, 0.0 }
  0x36   :  { %3664 = vst [vmem:[#allocation43_spill] sm:$0xff] %v2067_v45  ;;  %v216_v45 = vadd.f32 %v215_v56, %v214_v46  ;;  %v255_v56 = vmul.f32 %v1581_v13, %v1581_v13  ;;  %v256_v46 = vmul.f32 %v1593_v17, %v1593_v17  ;;  %v257_v17 = vmul.f32 %v1598_v18, %v1598_v18 }
  0x37   :  { %3665 = vst [vmem:[#allocation44_spill] sm:$0xff] %v2072_v51  ;;  %v2131_v51 = vld [vmem:[%s3570_s0 + $0x2b0] sm:$0xff]  ;;  %v240_v20 = vadd.f32 %v239_v29, %v2145_v23  ;;  %v2196_v29 = vld [vmem:[%s3570_s0 + $0x2c8] sm:$0xff] }
  0x38   :  { %3666 = vst [vmem:[#allocation45_spill] sm:$0xff] %v2077_v58  ;;  %v2126_v58 = vld [vmem:[%s3570_s0 + $0x2a8] sm:$0xff]  ;;  %217 = vadd.xlane.f32.xlu1 %v216_v45  ;;  %v360_v45 = vadd.f32 %v256_v46, %v255_v56 }
  0x39   :  { %3667 = vst [vmem:[#allocation46_spill] sm:$0xff] %v2088_v10  ;;  %v228_v28 = vadd.f32 %v2126_v58, %v2114_v12  ;;  %v205_v10 = vadd.f32 %v204_v32, %v2082_v33  ;;  %v250_v32 = vadd.f32 %v249_v43, %v2138_v24  ;;  %v233_v43 = vsel %vm124_vm0, %v2172_v53, 0.0 }
  0x3a   :  { %3668 = vst [vmem:[#allocation47_spill] sm:$0xff] %v2094_v9  ;;  %v369_v9 = vadd.f32 %v263_v41, %v262_v52  ;;  %v361_v56 = vadd.f32 %v360_v45, %v257_v17  ;;  %v3672_v45 = vld [vmem:[#allocation4_spill] sm:$0xff] }
  0x3b   :  { %3669 = vst [vmem:[#allocation48_spill] sm:$0xff] %v2114_v12  ;;  %v229_v52 = vadd.f32 %v228_v28, %v2131_v51  ;;  %v2186_v12 = vld [vmem:[%s3570_s0 + $0x2c0] sm:$0xff] }
  0x3c   :  { %3670 = vst [vmem:[#allocation49_spill] sm:$0xff] %v2126_v58  ;;  %v2167_v58 = vld [vmem:[%s3570_s0 + $0x300] sm:$0xff]  ;;  %v370_v41 = vadd.f32 %v369_v9, %v264_v57  ;;  %v374_v9 = vsel %vm124_vm0, %v268_v62, 0.0  ;;  %v207_v57 = vadd.f32 %v206_v55, %v205_v10  ;;  %v258_v55 = vmul.f32 %v1613_v21, %v1613_v21 }
  0x3d   :  { %3671 = vst [vmem:[#allocation50_spill] sm:$0xff] %v2172_v53  ;;  %v230_v13 = vadd.f32 %v229_v52, %v2162_v34  ;;  %v241_v8 = vadd.f32 %v240_v20, %v2167_v58  ;;  %v261_v10 = vmul.f32 %v1649_v31, %v1649_v31  ;;  %v290_v62 = vmul.f32 %v1622_v25, %v1622_v25 }
  0x3e   :  { %v371_v28 = vadd.f32 %v370_v41, %v265_v39  ;;  %v252_v52 = vadd.f32 %v251_v6, %v250_v32  ;;  %v259_v41 = vmul.f32 %v1644_v30, %v1644_v30  ;;  %v291_v20 = vmul.f32 %v1627_v26, %v1627_v26  ;;  %208 = vadd.xlane.f32.xlu0 %v207_v57 }
  0x3f   :  { %v231_v39 = vadd.f32 %v230_v13, %v2186_v12  ;;  %v292_v21 = vmul.f32 %v1632_v27, %v1632_v27  ;;  %v243_v46 = vadd.f32 %v242_v22, %v241_v8  ;;  %v365_v25 = vsel %vm124_vm0, %v261_v10, 0.0 }
  0x40   :  { %v372_v18 = vadd.f32 %v371_v28, %v266_v15  ;;  %v260_v15 = vmul.f32 %v1676_v40, %v1676_v40  ;;  %v293_v30 = vmul.f32 %v1659_v36, %v1659_v36  ;;  %v405_v6 = vadd.f32 %v291_v20, %v290_v62  ;;  %253 = vadd.xlane.f32.xlu2 %v252_v52 }
  0x41   :  { %v232_v31 = vadd.f32 %v231_v39, %v2196_v29  ;;  %v362_v32 = vadd.f32 %v361_v56, %v258_v55  ;;  %v294_v26 = vmul.f32 %v1682_v42, %v1682_v42  ;;  %v296_v27 = vmul.f32 %v1701_v49, %v1701_v49  ;;  %244 = vadd.xlane.f32.xlu1 %v243_v46 }
  0x42   :  { %v373_v53 = vadd.f32 %v372_v18, %v267_v63  ;;  %v283_v63 = vmul.f32 %v1532_v0, %v1532_v0  ;;  %v295_v40 = vmul.f32 %v1696_v48, %v1696_v48  ;;  %v406_v22 = vadd.f32 %v405_v6, %v292_v21 }
  0x43   :  { %v284_v57 = vmul.f32 %v1537_v1, %v1537_v1  ;;  %v285_v36 = vmul.f32 %v1542_v2, %v1542_v2  ;;  %v234_v13 = vadd.f32 %v233_v43, %v232_v31  ;;  %v363_v42 = vadd.f32 %v362_v32, %v259_v41  ;;  %v3674_v41 = vld [vmem:[#allocation2_spill] sm:$0xff] }
  0x44   :  { %v375_v28 = vadd.f32 %v374_v9, %v373_v53  ;;  %v286_v49 = vmul.f32 %v1549_v4, %v1549_v4  ;;  %v407_v17 = vadd.f32 %v406_v22, %v293_v30  ;;  %v289_v0 = vmul.f32 %v1586_v14, %v1586_v14  ;;  %v3675_v31 = vld [vmem:[#allocation6_spill] sm:$0xff]  ;;  %v3677_v30 = vld [vmem:[#allocation7_spill] sm:$0xff] }
  0x45   :  { %v396_v8 = vadd.f32 %v284_v57, %v283_v63  ;;  %v276_v48 = vmul.f32 %v1664_v37, %v1664_v37  ;;  %v364_v55 = vadd.f32 %v363_v42, %v260_v15  ;;  %v410_v1 = vsel %vm124_vm0, %v296_v27, 0.0  ;;  %v3676_v15 = vld [vmem:[#allocation3_spill] sm:$0xff]  ;;  %v3679_v63 = vld [vmem:[#allocation9_spill] sm:$0xff]  ;;  %v3680_v57 = vld [vmem:[#allocation10_spill] sm:$0xff] }
  0x46   :  { %v277_v2 = vmul.f32 %v1669_v38, %v1669_v38  ;;  %v278_v53 = vmul.f32 %v1688_v44, %v1688_v44  ;;  %v408_v9 = vadd.f32 %v407_v17, %v294_v26  ;;  %v287_v4 = vmul.f32 %v1560_v7, %v1560_v7  ;;  %235 = vadd.xlane.f32.xlu0 %v234_v13  ;;  %v3673_v7 = vld [vmem:[#allocation5_spill] sm:$0xff]  ;;  %v3681_v13 = vld [vmem:[#allocation12_spill] sm:$0xff]  ;;  %v3682_v17 = vld [vmem:[#allocation11_spill] sm:$0xff] }
  0x47   :  { %v288_v14 = vmul.f32 %v1571_v11, %v1571_v11  ;;  %v397_v43 = vadd.f32 %v396_v8, %v285_v36  ;;  %v401_v37 = vsel %vm124_vm0, %v289_v0, 0.0  ;;  %v279_v10 = vmul.f32 %v1706_v50, %v1706_v50 }
  0x48   :  { %v282_v38 = vmul.f32 %v1741_v61, %v1741_v61  ;;  %v387_v39 = vadd.f32 %v277_v2, %v276_v48  ;;  %v409_v18 = vadd.f32 %v408_v9, %v295_v40  ;;  %v311_v62 = vmul.f32 %v3672_v45, %v3672_v45  ;;  %385 = vadd.xlane.f32.xlu2 %v2098_v60  ;;  %v3683_v2 = vld [vmem:[#allocation13_spill] sm:$0xff] }
  0x49   :  { %v398_v44 = vadd.f32 %v397_v43, %v286_v49  ;;  %v312_v52 = vmul.f32 %v3673_v7, %v3673_v7  ;;  %v366_v11 = vadd.f32 %v365_v25, %v364_v55  ;;  %v280_v20 = vmul.f32 %v3674_v41, %v3674_v41  ;;  %v3678_v25 = vld [vmem:[#allocation8_spill] sm:$0xff]  ;;  %376 = vadd.xlane.f32.xlu1 %v375_v28 }
  0x4a   :  { %v388_v21 = vadd.f32 %v387_v39, %v278_v53  ;;  %v313_v50 = vmul.f32 %v3675_v31, %v3675_v31  ;;  %v281_v56 = vmul.f32 %v3676_v15, %v3676_v15  ;;  %v392_v46 = vsel %vm124_vm0, %v282_v38, 0.0  ;;  %v3689_v31 = vld [vmem:[#allocation19_spill] sm:$0xff] }
  0x4b   :  { %v399_v61 = vadd.f32 %v398_v44, %v287_v4  ;;  %v314_v6 = vmul.f32 %v3677_v30, %v3677_v30  ;;  %v317_v26 = vmul.f32 %v3678_v25, %v3678_v25  ;;  %v432_v27 = vadd.f32 %v312_v52, %v311_v62  ;;  %v3686_v44 = vld [vmem:[#allocation16_spill] sm:$0xff] }
  0x4c   :  { %v389_v32 = vadd.f32 %v388_v21, %v279_v10  ;;  %v304_v40 = vmul.f32 %v3679_v63, %v3679_v63  ;;  %v411_v22 = vadd.f32 %v410_v1, %v409_v18  ;;  %v305_v36 = vmul.f32 %v3680_v57, %v3680_v57  ;;  %v3685_v10 = vld [vmem:[#allocation15_spill] sm:$0xff] }
  0x4d   :  { %v400_v60 = vadd.f32 %v399_v61, %v288_v14  ;;  %v306_v42 = vmul.f32 %v3681_v13, %v3681_v13  ;;  %v315_v0 = vmul.f32 %v3682_v17, %v3682_v17  ;;  %v316_v8 = vmul.f32 %v1834_v16, %v1834_v16  ;;  %v3684_v14 = vld [vmem:[#allocation14_spill] sm:$0xff] }
  0x4e   :  { %v390_v49 = vadd.f32 %v389_v32, %v280_v20  ;;  %v433_v48 = vadd.f32 %v432_v27, %v313_v50  ;;  %v437_v55 = vsel %vm124_vm0, %v317_v26, 0.0  ;;  %v307_v28 = vmul.f32 %v3683_v2, %v3683_v2  ;;  %367 = vadd.xlane.f32.xlu0 %v366_v11  ;;  %v3688_v11 = vld [vmem:[#allocation17_spill] sm:$0xff]  ;;  %v3690_v61 = vld [vmem:[#allocation18_spill] sm:$0xff]  ;;  %v3693_v26 = vld [vmem:[#allocation23_spill] sm:$0xff] }
  0x4f   :  { %v310_v1 = vmul.f32 %v1871_v59, %v1871_v59  ;;  %v423_v53 = vadd.f32 %v305_v36, %v304_v40  ;;  %v297_v43 = vmul.f32 %v3684_v14, %v3684_v14  ;;  %v298_v38 = vmul.f32 %v3685_v10, %v3685_v10  ;;  %v3687_v59 = vld [vmem:[#allocation22_spill] sm:$0xff]  ;;  %v3694_v27 = vld [vmem:[#allocation24_spill] sm:$0xff]  ;;  %v3696_v36 = vld [vmem:[#allocation29_spill] sm:$0xff] }
  0x50   :  { %v391_v9 = vadd.f32 %v390_v49, %v281_v56  ;;  %v434_v4 = vadd.f32 %v433_v48, %v314_v6  ;;  %v402_v16 = vadd.f32 %v401_v37, %v400_v60  ;;  %v308_v39 = vmul.f32 %v1855_v47, %v1855_v47  ;;  %412 = vadd.xlane.f32.xlu2 %v411_v22  ;;  %v3691_v56 = vld [vmem:[#allocation20_spill] sm:$0xff]  ;;  %v3692_v6 = vld [vmem:[#allocation21_spill] sm:$0xff]  ;;  %v3698_v48 = vld [vmem:[#allocation27_spill] sm:$0xff] }
  0x51   :  { %v424_v18 = vadd.f32 %v423_v53, %v306_v42  ;;  %v299_v45 = vmul.f32 %v3686_v44, %v3686_v44  ;;  %v309_v7 = vmul.f32 %v3687_v59, %v3687_v59  ;;  %v428_v52 = vsel %vm124_vm0, %v310_v1, 0.0  ;;  %v3695_v60 = vld [vmem:[#allocation25_spill] sm:$0xff]  ;;  %v3699_v1 = vld [vmem:[#allocation28_spill] sm:$0xff] }
  0x52   :  { %v435_v62 = vadd.f32 %v434_v4, %v315_v0  ;;  %v300_v41 = vmul.f32 %v3688_v11, %v3688_v11  ;;  %v393_v20 = vadd.f32 %v392_v46, %v391_v9  ;;  %v414_v37 = vadd.f32 %v298_v38, %v297_v43  ;;  %403 = vadd.xlane.f32.xlu1 %v402_v16  ;;  %v3697_v0 = vld [vmem:[#allocation26_spill] sm:$0xff] }
  0x53   :  { %v425_v21 = vadd.f32 %v424_v18, %v307_v28  ;;  %v332_v47 = vmul.f32 %v3689_v31, %v3689_v31  ;;  %v303_v15 = vmul.f32 %v3690_v61, %v3690_v61  ;;  %v333_v30 = vmul.f32 %v3691_v56, %v3691_v56  ;;  %v3700_v9 = vld [vmem:[#allocation30_spill] sm:$0xff]  ;;  %v3706_v31 = vld [vmem:[#allocation33_spill] sm:$0xff] }
  0x54   :  { %v436_v50 = vadd.f32 %v435_v62, %v316_v8  ;;  %v334_v32 = vmul.f32 %v3692_v6, %v3692_v6  ;;  %v301_v46 = vmul.f32 %v3693_v26, %v3693_v26  ;;  %v302_v63 = vmul.f32 %v3694_v27, %v3694_v27  ;;  %v3709_v26 = vld [vmem:[#allocation38_spill] sm:$0xff]  ;;  %v3710_v27 = vld [vmem:[#allocation39_spill] sm:$0xff] }
  0x55   :  { %v426_v25 = vadd.f32 %v425_v21, %v308_v39  ;;  %v415_v40 = vadd.f32 %v414_v37, %v299_v45  ;;  %v335_v57 = vmul.f32 %v3695_v60, %v3695_v60  ;;  %v338_v13 = vmul.f32 %v3696_v36, %v3696_v36  ;;  %v3701_v39 = vld [vmem:[#allocation31_spill] sm:$0xff]  ;;  %v3702_v45 = vld [vmem:[#allocation32_spill] sm:$0xff]  ;;  %v3705_v21 = vld [vmem:[#allocation41_spill] sm:$0xff] }
  0x56   :  { %v438_v22 = vadd.f32 %v437_v55, %v436_v50  ;;  %v459_v42 = vadd.f32 %v333_v30, %v332_v47  ;;  %v325_v8 = vmul.f32 %v3697_v0, %v3697_v0  ;;  %v326_v2 = vmul.f32 %v3698_v48, %v3698_v48  ;;  %394 = vadd.xlane.f32.xlu0 %v393_v20 }
  0x57   :  { %v427_v49 = vadd.f32 %v426_v25, %v309_v7  ;;  %v416_v17 = vadd.f32 %v415_v40, %v300_v41  ;;  %v419_v28 = vsel %vm124_vm0, %v303_v15, 0.0  ;;  %v336_v55 = vmul.f32 %v3699_v1, %v3699_v1  ;;  %v3704_v41 = vld [vmem:[#allocation35_spill] sm:$0xff]  ;;  %v3707_v15 = vld [vmem:[#allocation36_spill] sm:$0xff]  ;;  %v3711_v40 = vld [vmem:[#allocation42_spill] sm:$0xff] }
  0x58   :  { %v460_v53 = vadd.f32 %v459_v42, %v334_v32  ;;  %v327_v4 = vmul.f32 %v3700_v9, %v3700_v9  ;;  %v337_v10 = vmul.f32 %v1971_v3, %v1971_v3  ;;  %v464_v38 = vsel %vm124_vm0, %v338_v13, 0.0  ;;  %439 = vadd.xlane.f32.xlu2 %v438_v22  ;;  %v3715_v9 = vld [vmem:[#allocation45_spill] sm:$0xff] }
  0x59   :  { %v429_v14 = vadd.f32 %v428_v52, %v427_v49  ;;  %v417_v43 = vadd.f32 %v416_v17, %v301_v46  ;;  %v328_v18 = vmul.f32 %v3701_v39, %v3701_v39  ;;  %v450_v44 = vadd.f32 %v326_v2, %v325_v8  ;;  %v3703_v52 = vld [vmem:[#allocation34_spill] sm:$0xff]  ;;  %v3713_v8 = vld [vmem:[#allocation43_spill] sm:$0xff] }
  0x5a   :  { %v461_v16 = vadd.f32 %v460_v53, %v335_v57  ;;  %v318_v62 = vmul.f32 %v3702_v45, %v3702_v45  ;;  %v329_v7 = vmul.f32 %v2009_v5, %v2009_v5  ;;  %v319_v11 = vmul.f32 %v3703_v52, %v3703_v52  ;;  %v3708_v5 = vld [vmem:[#allocation37_spill] sm:$0xff]  ;;  %v3712_v57 = vld [vmem:[#allocation40_spill] sm:$0xff] }
  0x5b   :  { %v418_v59 = vadd.f32 %v417_v43, %v302_v63  ;;  %v320_v3 = vmul.f32 %v3704_v41, %v3704_v41  ;;  %v330_v37 = vmul.f32 %v3705_v21, %v3705_v21  ;;  %v331_v47 = vmul.f32 %v3706_v31, %v3706_v31  ;;  %430 = vadd.xlane.f32.xlu1 %v429_v14  ;;  %v3716_v14 = vld [vmem:[#allocation47_spill] sm:$0xff]  ;;  %v3718_v52 = vld [vmem:[#allocation48_spill] sm:$0xff]  ;;  %v3719_v41 = vld [vmem:[#allocation49_spill] sm:$0xff] }
  0x5c   :  { %v462_v20 = vadd.f32 %v461_v16, %v336_v55  ;;  %v451_v50 = vadd.f32 %v450_v44, %v327_v4  ;;  %v321_v56 = vmul.f32 %v3707_v15, %v3707_v15  ;;  %v324_v30 = vmul.f32 %v3708_v5, %v3708_v5 }
  0x5d   :  { %v420_v61 = vadd.f32 %v419_v28, %v418_v59  ;;  %v441_v6 = vadd.f32 %v319_v11, %v318_v62  ;;  %v353_v46 = vmul.f32 %v3709_v26, %v3709_v26  ;;  %v354_v63 = vmul.f32 %v3710_v27, %v3710_v27  ;;  %v3714_v28 = vld [vmem:[#allocation44_spill] sm:$0xff] }
  0x5e   :  { %v463_v32 = vadd.f32 %v462_v20, %v337_v10  ;;  %v452_v25 = vadd.f32 %v451_v50, %v328_v18  ;;  %v322_v22 = vmul.f32 %v3711_v40, %v3711_v40  ;;  %v355_v36 = vmul.f32 %v3712_v57, %v3712_v57 }
  0x5f   :  { %v442_v60 = vadd.f32 %v441_v6, %v320_v3  ;;  %421 = vadd.xlane.f32.xlu0 %v420_v61  ;;  %v455_v49 = vsel %vm124_vm0, %v331_v47, 0.0  ;;  %v323_v17 = vmul.f32 %v2082_v33, %v2082_v33  ;;  %v356_v48 = vmul.f32 %v3713_v8, %v3713_v8 }
  0x60   :  { %v465_v13 = vadd.f32 %v464_v38, %v463_v32  ;;  %v453_v42 = vadd.f32 %v452_v25, %v329_v7  ;;  %v486_v2 = vadd.f32 %v354_v63, %v353_v46  ;;  %v346_v1 = vmul.f32 %v3714_v28, %v3714_v28  ;;  %v3717_v38 = vld [vmem:[#allocation46_spill] sm:$0xff] }
  0x61   :  { %v443_v0 = vadd.f32 %v442_v60, %v321_v56  ;;  %v446_v53 = vsel %vm124_vm0, %v324_v30, 0.0  ;;  %v347_v4 = vmul.f32 %v3715_v9, %v3715_v9  ;;  %v348_v43 = vmul.f32 %v3716_v14, %v3716_v14  ;;  %v3720_v32 = vld [vmem:[#allocation50_spill] sm:$0xff] }
  0x62   :  { %v454_v55 = vadd.f32 %v453_v42, %v330_v37  ;;  %466 = vadd.xlane.f32.xlu2 %v465_v13  ;;  %v357_v33 = vmul.f32 %v2104_v54, %v2104_v54  ;;  %v359_v16 = vmul.f32 %v3717_v38, %v3717_v38  ;;  %v487_v39 = vadd.f32 %v486_v2, %v355_v36 }
  0x63   :  { %v444_v10 = vadd.f32 %v443_v0, %v322_v22  ;;  %v358_v44 = vmul.f32 %v2138_v24, %v2138_v24  ;;  %v349_v45 = vmul.f32 %v2109_v19, %v2109_v19  ;;  %v477_v62 = vadd.f32 %v347_v4, %v346_v1 }
  0x64   :  { %v456_v18 = vadd.f32 %v455_v49, %v454_v55  ;;  %v488_v7 = vadd.f32 %v487_v39, %v356_v48  ;;  %v339_v11 = vmul.f32 %v3718_v52, %v3718_v52  ;;  %v340_v54 = vmul.f32 %v3719_v41, %v3719_v41 }
  0x65   :  { %v445_v59 = vadd.f32 %v444_v10, %v323_v17  ;;  %v350_v3 = vmul.f32 %v2145_v23, %v2145_v23  ;;  %v478_v20 = vadd.f32 %v477_v62, %v348_v43  ;;  %v341_v24 = vmul.f32 %v2131_v51, %v2131_v51 }
  0x66   :  { %457 = vadd.xlane.f32.xlu1 %v456_v18  ;;  %v489_v37 = vadd.f32 %v488_v7, %v357_v33  ;;  %v491_v19 = vsel %vm124_vm0, %v359_v16, 0.0  ;;  %v352_v31 = vmul.f32 %v2150_v35, %v2150_v35  ;;  %v351_v47 = vmul.f32 %v2167_v58, %v2167_v58 }
  0x67   :  { %v447_v21 = vadd.f32 %v446_v53, %v445_v59  ;;  %v479_v50 = vadd.f32 %v478_v20, %v349_v45  ;;  %v342_v61 = vmul.f32 %v2162_v34, %v2162_v34  ;;  %v468_v15 = vadd.f32 %v340_v54, %v339_v11 }
  0x68   :  { %v490_v23 = vadd.f32 %v489_v37, %v358_v44  ;;  %v343_v51 = vmul.f32 %v2186_v12, %v2186_v12  ;;  %v482_v6 = vsel %vm124_vm0, %v352_v31, 0.0  ;;  %v345_v35 = vmul.f32 %v3720_v32, %v3720_v32 }
  0x69   :  { %448 = vadd.xlane.f32.xlu0 %v447_v21  ;;  %v480_v56 = vadd.f32 %v479_v50, %v350_v3  ;;  %v469_v5 = vadd.f32 %v468_v15, %v341_v24  ;;  %v344_v58 = vmul.f32 %v2196_v29, %v2196_v29  ;;  %v1508_v16 = vmov 0  }
  0x6a   :  { %v492_v30 = vadd.f32 %v491_v19, %v490_v23  ;;  %v473_v27 = vsel %vm124_vm0, %v345_v35, 0.0  ;;  %1372 = vset.pattern.permute.xlu2 %v1508_v16  ;;  %1371 = vset.pattern.permute.xlu1 %v1508_v16 }
  0x6b   :  { %v481_v25 = vadd.f32 %v480_v56, %v351_v47  ;;  %v470_v26 = vadd.f32 %v469_v5, %v342_v61  ;;  %1370 = vset.pattern.permute.xlu0 %v1508_v16 }
  0x6c   :  { %493 = vadd.xlane.f32.xlu2 %v492_v30 }
  0x6d   :  { %v483_v34 = vadd.f32 %v482_v6, %v481_v25  ;;  %v471_v46 = vadd.f32 %v470_v26, %v343_v51 }
  0x6f   :  { %484 = vadd.xlane.f32.xlu1 %v483_v34  ;;  %v472_v63 = vadd.f32 %v471_v46, %v344_v58 }
  0x71   :  { %v474_v12 = vadd.f32 %v473_v27, %v472_v63 }
  0x73   :  { %475 = vadd.xlane.f32.xlu0 %v474_v12 }
  0x81   :  { %v164_v40 = vpop.xlane.xlu2 %163 }
  0x82   :  { %v2408_v62 = vmul.f32 0.0012755102, %v164_v40 }
  0x83   :  { %v146_v22 = vpop.xlane.xlu1 %145 }
  0x84   :  { %v2392_v28 = vmul.f32 0.0012755102, %v146_v22  ;;  %v529_v37 = vmul.f32 %v2408_v62, %v2408_v62 }
  0x85   :  { %v128_v60 = vpop.xlane.xlu0 %127 }
  0x86   :  { %v527_v9 = vmul.f32 %v2392_v28, %v2392_v28  ;;  %v2400_v14 = vmul.f32 0.0012755102, %v128_v60 }
  0x88   :  { %v525_v59 = vmul.f32 %v2400_v14, %v2400_v14 }
  0x89   :  { %v173_v57 = vpop.xlane.xlu2 %172 }
  0x8a   :  { %v2404_v39 = vmul.f32 0.0012755102, %v173_v57 }
  0x8b   :  { %v155_v36 = vpop.xlane.xlu1 %154 }
  0x8c   :  { %v2415_v11 = vmul.f32 0.0012755102, %v155_v36  ;;  %v530_v20 = vmul.f32 %v2404_v39, %v2404_v39 }
  0x8d   :  { %v137_v13 = vpop.xlane.xlu0 %136 }
  0x8e   :  { %v2396_v55 = vmul.f32 0.0012755102, %v137_v13  ;;  %v528_v56 = vmul.f32 %v2415_v11, %v2415_v11 }
  0x90   :  { %v526_v10 = vmul.f32 %v2396_v55, %v2396_v55 }
  0x92   :  { %v200_v42 = vpop.xlane.xlu2 %199 }
  0x93   :  { %v2417_v41 = vmul.f32 0.0012755102, %v200_v42 }
  0x95   :  { %v191_v49 = vpop.xlane.xlu1 %190  ;;  %v533_v51 = vmul.f32 %v2417_v41, %v2417_v41 }
  0x96   :  { %v2421_v24 = vmul.f32 0.0012755102, %v191_v49 }
  0x97   :  { %v182_v17 = vpop.xlane.xlu0 %181 }
  0x98   :  { %v2426_v19 = vmul.f32 0.0012755102, %v182_v17  ;;  %v532_v30 = vmul.f32 %v2421_v24, %v2421_v24 }
  0x9a   :  { %v531_v58 = vmul.f32 %v2426_v19, %v2426_v19 }
  0xa5   :  { %v227_v29 = vpop.xlane.xlu2 %226 }
  0xa6   :  { %v2430_v50 = vmul.f32 0.0012755102, %v227_v29 }
  0xa8   :  { %v2457_v63 = vmul.f32 %v2430_v50, %v2430_v50 }
  0xab   :  { %v218_v0 = vpop.xlane.xlu1 %217 }
  0xac   :  { %v2432_v61 = vmul.f32 0.0012755102, %v218_v0 }
  0xae   :  { %v2461_v12 = vmul.f32 %v2432_v61, %v2432_v61 }
  0xb1   :  { %v209_v8 = vpop.xlane.xlu0 %208 }
  0xb2   :  { %v2443_v6 = vmul.f32 0.0012755102, %v209_v8 }
  0xb3   :  { %v254_v48 = vpop.xlane.xlu2 %253 }
  0xb4   :  { %v245_v2 = vpop.xlane.xlu1 %244  ;;  %v2449_v26 = vmul.f32 0.0012755102, %v254_v48  ;;  %v2473_v42 = vmul.f32 %v2443_v6, %v2443_v6 }
  0xb5   :  { %v2463_v40 = vmul.f32 0.0012755102, %v245_v2 }
  0xb6   :  { %v2483_v0 = vmul.f32 %v2449_v26, %v2449_v26 }
  0xb9   :  { %v2394_v1 = vpop.xlane.xlu0 %235 }
  0xba   :  { %v2476_v49 = vmul.f32 0.0012755102, %v2394_v1 }
  0xbb   :  { %v386_v53 = vpop.xlane.xlu2 %385 }
  0xbc   :  { %v512_v4 = vmul.f32 0.0012755102, %v386_v53  ;;  %v377_v43 = vpop.xlane.xlu1 %376 }
  0xbd   :  { %v511_v38 = vmul.f32 0.0012755102, %v377_v43 }
  0xbe   :  { %v542_v33 = vsub.f32 %v512_v4, %v527_v9  ;;  %v2490_v9 = vmul.f32 %v2463_v40, %v2463_v40 }
  0xbf   :  { %v541_v44 = vsub.f32 %v511_v38, %v526_v10  ;;  %v2498_v38 = vmul.f32 %v2476_v49, %v2476_v49 }
  0xc0   :  { %v2406_v18 = vadd.f32 1e-05, %v542_v33 }
  0xc1   :  { %v368_v45 = vpop.xlane.xlu0 %367  ;;  %v2413_v52 = vadd.f32 1e-05, %v541_v44 }
  0xc2   :  { %v510_v7 = vmul.f32 0.0012755102, %v368_v45  ;;  %1373 = vrsqrt.f32 %v2406_v18  ;;  %vm596_vm2 = vweird.f32 %v2406_v18 }
  0xc3   :  { %v413_v3 = vpop.xlane.xlu2 %412  ;;  %1375 = vrsqrt.f32 %v2413_v52  ;;  %vm586_vm3 = vweird.f32 %v2413_v52 }
  0xc4   :  { %v540_v54 = vsub.f32 %v510_v7, %v525_v59  ;;  %v515_v21 = vmul.f32 0.0012755102, %v413_v3 }
  0xc5   :  { %v404_v47 = vpop.xlane.xlu1 %403 }
  0xc6   :  { %v2428_v31 = vadd.f32 1e-05, %v540_v54  ;;  %v545_v15 = vsub.f32 %v515_v21, %v530_v20  ;;  %v514_v23 = vmul.f32 0.0012755102, %v404_v47 }
  0xc8   :  { %1377 = vrsqrt.f32 %v2428_v31  ;;  %v2439_v5 = vpop.eup %1373  ;;  %v2445_v32 = vadd.f32 1e-05, %v545_v15  ;;  %v544_v35 = vsub.f32 %v514_v23, %v529_v37  ;;  %vm576_vm7 = vweird.f32 %v2428_v31 }
  0xc9   :  { %v395_v25 = vpop.xlane.xlu0 %394  ;;  %v591_v34 = vmul.f32 %v2439_v5, %v2406_v18  ;;  %v2453_v27 = vpop.eup %1375  ;;  %vm597_vm1 = vweird.f32 %v2439_v5  ;;  %v722_v18 = vld [vmem:[%s3571_s1 + $0x10] sm:$0xff] }
  0xca   :  { %v513_v46 = vmul.f32 0.0012755102, %v395_v25  ;;  %v2465_v22 = vadd.f32 1e-05, %v544_v35  ;;  %v581_v57 = vmul.f32 %v2453_v27, %v2413_v52  ;;  %1379 = vrsqrt.f32 %v2445_v32  ;;  %vm598_vm4 = vmor %vm596_vm2, %vm597_vm1  ;;  %v720_v52 = vld [vmem:[%s3571_s1] sm:$0xff] }
  0xcb   :  { %v592_v60 = vmul.f32 %v2439_v5, %v591_v34  ;;  %v440_v13 = vpop.xlane.xlu2 %439  ;;  %vm587_vm5 = vweird.f32 %v2453_v27 }
  0xcc   :  { %v543_v36 = vsub.f32 %v513_v46, %v528_v56  ;;  %1381 = vrsqrt.f32 %v2465_v22  ;;  %v518_v17 = vmul.f32 0.0012755102, %v440_v13  ;;  %v582_v48 = vmul.f32 %v2453_v27, %v581_v57  ;;  %vm588_vm9 = vmor %vm586_vm3, %vm587_vm5 }
  0xcd   :  { %v593_v8 = vmul.f32 0.5, %v592_v60  ;;  %vm616_vm8 = vweird.f32 %v2465_v22  ;;  %vm626_vm3 = vweird.f32 %v2445_v32 }
  0xce   :  { %v2479_v29 = vpop.eup %1377  ;;  %v2486_v2 = vadd.f32 1e-05, %v543_v36  ;;  %v431_v53 = vpop.xlane.xlu1 %430  ;;  %v548_v4 = vsub.f32 %v518_v17, %v533_v51  ;;  %v583_v33 = vmul.f32 0.5, %v582_v48  ;;  %v721_v17 = vld [vmem:[%s3571_s1 + $0x8] sm:$0xff] }
  0xcf   :  { %v571_v1 = vmul.f32 %v2479_v29, %v2428_v31  ;;  %v517_v43 = vmul.f32 0.0012755102, %v431_v53  ;;  %v594_v10 = vsub.f32 1.5, %v593_v8  ;;  %vm577_vm6 = vweird.f32 %v2479_v29 }
  0xd0   :  { %1383 = vrsqrt.f32 %v2486_v2  ;;  %v2501_v44 = vadd.f32 1e-05, %v548_v4  ;;  %v2503_v7 = vpop.eup %1379  ;;  %v584_v21 = vsub.f32 1.5, %v583_v33  ;;  %vm2557_vm10 = vmor %vm576_vm7, %vm577_vm6  ;;  %vm606_vm11 = vweird.f32 %v2486_v2 }
  0xd1   :  { %v572_v16 = vmul.f32 %v2479_v29, %v571_v1  ;;  %v547_v45 = vsub.f32 %v517_v43, %v532_v30  ;;  %v595_v3 = vmul.f32 %v2439_v5, %v594_v10  ;;  %v621_v34 = vmul.f32 %v2503_v7, %v2445_v32  ;;  %v723_v43 = vld [vmem:[%s3571_s1 + $0x18] sm:$0xff] }
  0xd2   :  { %v422_v59 = vpop.xlane.xlu0 %421  ;;  %v2508_v20 = vpop.eup %1381  ;;  %1385 = vrsqrt.f32 %v2501_v44  ;;  %v585_v13 = vmul.f32 %v2453_v27, %v584_v21  ;;  %vm627_vm5 = vweird.f32 %v2503_v7 }
  0xd3   :  { %v516_v54 = vmul.f32 0.0012755102, %v422_v59  ;;  %v573_v37 = vmul.f32 0.5, %v572_v16  ;;  %v2511_v47 = vadd.f32 1e-05, %v547_v45  ;;  %v611_v15 = vmul.f32 %v2508_v20, %v2465_v22  ;;  %vm628_vm6 = vmor %vm626_vm3, %vm627_vm5 }
  0xd4   :  { %v599_v51 = vsel %vm598_vm4, %v2439_v5, %v595_v3  ;;  %v589_v31 = vsel %vm588_vm9, %v2453_v27, %v585_v13  ;;  %v622_v10 = vmul.f32 %v2503_v7, %v621_v34  ;;  %vm617_vm12 = vweird.f32 %v2508_v20 }
  0xd5   :  { %v546_v23 = vsub.f32 %v516_v54, %v531_v58  ;;  %v467_v56 = vpop.xlane.xlu2 %466  ;;  %v574_v30 = vsub.f32 1.5, %v573_v37  ;;  %1387 = vrsqrt.f32 %v2511_v47  ;;  %v612_v46 = vmul.f32 %v2508_v20, %v611_v15  ;;  %vm618_vm14 = vmor %vm616_vm8, %vm617_vm12 }
  0xd6   :  { %v521_v35 = vmul.f32 0.0012755102, %v467_v56  ;;  %v2524_v25 = vpop.eup %1383  ;;  %v2531_v58 = vmul.f32 %v722_v18, %v599_v51  ;;  %v2565_v45 = vmul.f32 %v721_v17, %v589_v31  ;;  %vm646_vm13 = vweird.f32 %v2511_v47 }
  0xd7   :  { %v2529_v60 = vadd.f32 1e-05, %v546_v23  ;;  %v601_v5 = vmul.f32 %v2524_v25, %v2486_v2  ;;  %v575_v8 = vmul.f32 %v2479_v29, %v574_v30  ;;  %v613_v48 = vmul.f32 0.5, %v612_v46  ;;  %v724_v46 = vld [vmem:[%s3571_s1 + $0x20] sm:$0xff]  ;;  %v727_v2 = vld [vmem:[%s3571_s1 + $0x38] sm:$0xff] }
  0xd8   :  { %v551_v57 = vsub.f32 %v521_v35, %v2457_v63  ;;  %807 = vperm.xlu2 %1372, %v2531_v58   ;;  %v2549_v63 = vpop.eup %1385  ;;  %802 = vperm.xlu1 %1371, %v2565_v45   ;;  %vm607_vm15 = vweird.f32 %v2524_v25 }
  0xd9   :  { %v458_v36 = vpop.xlane.xlu1 %457  ;;  %1389 = vrsqrt.f32 %v2529_v60  ;;  %v602_v53 = vmul.f32 %v2524_v25, %v601_v5  ;;  %v614_v33 = vsub.f32 1.5, %v613_v48  ;;  %v579_v27 = vsel %vm2557_vm10, %v2479_v29, %v575_v8  ;;  %vm608_vm1 = vmor %vm606_vm11, %vm607_vm15 }
  0xda   :  { %v2552_v1 = vadd.f32 1e-05, %v551_v57  ;;  %v520_v4 = vmul.f32 0.0012755102, %v458_v36  ;;  %v651_v21 = vmul.f32 %v2549_v63, %v2501_v44  ;;  %v2580_v15 = vmul.f32 %v720_v52, %v579_v27 }
  0xdb   :  { %v2570_v59 = vpop.eup %1387  ;;  %v603_v54 = vmul.f32 0.5, %v602_v53  ;;  %v615_v56 = vmul.f32 %v2508_v20, %v614_v33  ;;  %vm636_vm8 = vweird.f32 %v2529_v60  ;;  %vm657_vm11 = vweird.f32 %v2549_v63 }
  0xdc   :  { %v449_v16 = vpop.xlane.xlu0 %448  ;;  %1391 = vrsqrt.f32 %v2552_v1  ;;  %v550_v3 = vsub.f32 %v520_v4, %v2461_v12  ;;  %v641_v37 = vmul.f32 %v2570_v59, %v2511_v47  ;;  %v623_v12 = vmul.f32 0.5, %v622_v10  ;;  %797 = vperm.xlu0 %1370, %v2580_v15  }
  0xdd   :  { %v519_v18 = vmul.f32 0.0012755102, %v449_v16  ;;  %v604_v29 = vsub.f32 1.5, %v603_v54  ;;  %v619_v17 = vsel %vm618_vm14, %v2508_v20, %v615_v56  ;;  %vm647_vm2 = vweird.f32 %v2570_v59 }
  0xde   :  { %v2582_v23 = vadd.f32 1e-05, %v550_v3  ;;  %v642_v30 = vmul.f32 %v2570_v59, %v641_v37  ;;  %v2609_v31 = vmul.f32 %v724_v46, %v619_v17  ;;  %v624_v52 = vsub.f32 1.5, %v623_v12  ;;  %vm648_vm4 = vmor %vm646_vm13, %vm647_vm2 }
  0xdf   :  { %v2586_v51 = vpop.eup %1389  ;;  %v549_v35 = vsub.f32 %v519_v18, %v2473_v42  ;;  %v494_v34 = vpop.xlane.xlu2 %493  ;;  %v652_v42 = vmul.f32 %v2549_v63, %v651_v21  ;;  %v605_v22 = vmul.f32 %v2524_v25, %v604_v29  ;;  %vm656_vm13 = vweird.f32 %v2501_v44 }
  0xe0   :  { %v631_v5 = vmul.f32 %v2586_v51, %v2529_v60  ;;  %1393 = vrsqrt.f32 %v2582_v23  ;;  %v524_v57 = vmul.f32 0.0012755102, %v494_v34  ;;  %v643_v36 = vmul.f32 0.5, %v642_v30  ;;  %817 = vperm.xlu1 %1371, %v2609_v31   ;;  %vm658_vm2 = vmor %vm656_vm13, %vm657_vm11 }
  0xe1   :  { %v2602_v13 = vadd.f32 1e-05, %v549_v35  ;;  %v609_v27 = vsel %vm608_vm1, %v2524_v25, %v605_v22  ;;  %v653_v54 = vmul.f32 0.5, %v652_v42  ;;  %vm637_vm7 = vweird.f32 %v2586_v51 }
  0xe2   :  { %v2605_v8 = vpop.eup %1391  ;;  %v632_v48 = vmul.f32 %v2586_v51, %v631_v5  ;;  %v554_v53 = vsub.f32 %v524_v57, %v2483_v0  ;;  %v485_v4 = vpop.xlane.xlu1 %484  ;;  %v644_v10 = vsub.f32 1.5, %v643_v36  ;;  %v2626_v3 = vmul.f32 %v723_v43, %v609_v27  ;;  %vm638_vm9 = vmor %vm636_vm8, %vm637_vm7 }
  0xe3   :  { %v681_v20 = vmul.f32 %v2605_v8, %v2552_v1  ;;  %1395 = vrsqrt.f32 %v2602_v13  ;;  %v523_v16 = vmul.f32 0.0012755102, %v485_v4  ;;  %v654_v5 = vsub.f32 1.5, %v653_v54  ;;  %v730_v54 = vld [vmem:[%s3571_s1 + $0x50] sm:$0xff] }
  0xe4   :  { %v633_v0 = vmul.f32 0.5, %v632_v48  ;;  %v2622_v33 = vadd.f32 1e-05, %v554_v53  ;;  %v645_v21 = vmul.f32 %v2570_v59, %v644_v10  ;;  %812 = vperm.xlu2 %1372, %v2626_v3   ;;  %vm676_vm12 = vweird.f32 %v2582_v23 }
  0xe5   :  { %v553_v25 = vsub.f32 %v523_v16, %v2490_v9  ;;  %v682_v56 = vmul.f32 %v2605_v8, %v681_v20  ;;  %v625_v9 = vmul.f32 %v2503_v7, %v624_v52  ;;  %v726_v52 = vld [vmem:[%s3571_s1 + $0x30] sm:$0xff]  ;;  %v655_v10 = vmul.f32 %v2549_v63, %v654_v5 }
  0xe6   :  { %v2633_v37 = vpop.eup %1393  ;;  %v634_v18 = vsub.f32 1.5, %v633_v0  ;;  %1397 = vrsqrt.f32 %v2622_v33  ;;  %v476_v29 = vpop.xlane.xlu0 %475  ;;  %v649_v35 = vsel %vm648_vm4, %v2570_v59, %v645_v21  ;;  %v725_v59 = vld [vmem:[%s3571_s1 + $0x28] sm:$0xff]  ;;  %vm666_vm1 = vweird.f32 %v2602_v13 }
  0xe7   :  { %v671_v12 = vmul.f32 %v2633_v37, %v2582_v23  ;;  %v522_v30 = vmul.f32 0.0012755102, %v476_v29  ;;  %v2645_v34 = vadd.f32 1e-05, %v553_v25  ;;  %v2647_v46 = vmul.f32 %v727_v2, %v649_v35 }
  0xe8   :  { %v629_v17 = vsel %vm628_vm6, %v2503_v7, %v625_v9  ;;  %v635_v48 = vmul.f32 %v2586_v51, %v634_v18  ;;  %vm677_vm10 = vweird.f32 %v2633_v37  ;;  %v659_v44 = vsel %vm658_vm2, %v2549_v63, %v655_v10 }
  0xe9   :  { %v1396_v47 = vpop.eup %1395  ;;  %v672_v57 = vmul.f32 %v2633_v37, %v671_v12  ;;  %v552_v42 = vsub.f32 %v522_v30, %v2498_v38  ;;  %1399 = vrsqrt.f32 %v2645_v34  ;;  %832 = vperm.xlu0 %1370, %v2647_v46   ;;  %v683_v38 = vmul.f32 0.5, %v682_v56  ;;  %vm678_vm14 = vmor %vm676_vm12, %vm677_vm10  ;;  %v728_v56 = vld [vmem:[%s3571_s1 + $0x40] sm:$0xff]  ;;  %v729_v12 = vld [vmem:[%s3571_s1 + $0x48] sm:$0xff] }
  0xea   :  { %v661_v36 = vmul.f32 %v1396_v47, %v2602_v13  ;;  %v2669_v43 = vmul.f32 %v725_v59, %v629_v17  ;;  %v639_v0 = vsel %vm638_vm9, %v2586_v51, %v635_v48  ;;  %vm667_vm15 = vweird.f32 %v1396_v47 }
  0xeb   :  { %v673_v53 = vmul.f32 0.5, %v672_v57  ;;  %v2663_v4 = vadd.f32 1e-05, %v552_v42  ;;  %v2683_v16 = vmul.f32 %v726_v52, %v639_v0  ;;  %v684_v51 = vsub.f32 1.5, %v683_v38  ;;  %vm668_vm3 = vmor %vm666_vm1, %vm667_vm15 }
  0xec   :  { %v2666_v32 = vpop.eup %1397  ;;  %v662_v22 = vmul.f32 %v1396_v47, %v661_v36  ;;  %822 = vperm.xlu2 %1372, %v2669_v43   ;;  %v2709_v63 = vmul.f32 %v728_v56, %v659_v44  ;;  %vm687_vm4 = vweird.f32 %v2605_v8  ;;  %vm686_vm6 = vweird.f32 %v2552_v1  ;;  %v731_v1 = vld [vmem:[%s3571_s1 + $0x58] sm:$0xff] }
  0xed   :  { %v674_v7 = vsub.f32 1.5, %v673_v53  ;;  %1401 = vrsqrt.f32 %v2663_v4  ;;  %v711_v60 = vmul.f32 %v2666_v32, %v2622_v33  ;;  %827 = vperm.xlu1 %1371, %v2683_v16   ;;  %v685_v36 = vmul.f32 %v2605_v8, %v684_v51  ;;  %v733_v53 = vld [vmem:[%s3571_s1 + $0x68] sm:$0xff]  ;;  %vm688_vm8 = vmor %vm686_vm6, %vm687_vm4 }
  0xee   :  { %v663_v20 = vmul.f32 0.5, %v662_v22  ;;  %vm706_vm7 = vweird.f32 %v2645_v34  ;;  %vm696_vm11 = vweird.f32 %v2663_v4  ;;  %vm717_vm13 = vweird.f32 %v2666_v32 }
  0xef   :  { %v675_v27 = vmul.f32 %v2633_v37, %v674_v7  ;;  %v1400_v21 = vpop.eup %1399  ;;  %v712_v25 = vmul.f32 %v2666_v32, %v711_v60  ;;  %v689_v52 = vsel %vm688_vm8, %v2605_v8, %v685_v36  ;;  %v765_v51 = vmul.f32 %v2580_v15, %v2400_v14  ;;  %v752_v15 = vld [vmem:[%s3572_s2 + $0x10] sm:$0xff] }
  0xf0   :  { %v664_v2 = vsub.f32 1.5, %v663_v20  ;;  %v701_v23 = vmul.f32 %v1400_v21, %v2645_v34  ;;  %vm707_vm5 = vweird.f32 %v1400_v21  ;;  %v732_v20 = vld [vmem:[%s3571_s1 + $0x60] sm:$0xff]  ;;  %v746_v60 = vmul.f32 %v731_v1, %v689_v52 }
  0xf1   :  { %v679_v18 = vsel %vm678_vm14, %v2633_v37, %v675_v27  ;;  %v713_v42 = vmul.f32 0.5, %v712_v25  ;;  %vm708_vm9 = vmor %vm706_vm7, %vm707_vm5  ;;  %vm716_vm14 = vweird.f32 %v2622_v33  ;;  %v767_v14 = vmul.f32 %v2531_v58, %v2392_v28  ;;  %v757_v28 = vld [vmem:[%s3572_s2 + $0x38] sm:$0xff]  ;;  %v755_v58 = vld [vmem:[%s3572_s2 + $0x28] sm:$0xff] }
  0xf2   :  { %v2697_v29 = vmul.f32 %v730_v54, %v679_v18  ;;  %v665_v13 = vmul.f32 %v1396_v47, %v664_v2  ;;  %v702_v37 = vmul.f32 %v1400_v21, %v701_v23  ;;  %v751_v54 = vld [vmem:[%s3572_s2 + $0x8] sm:$0xff]  ;;  %vm718_vm15 = vmor %vm716_vm14, %vm717_vm13  ;;  %v734_v2 = vld [vmem:[%s3571_s1 + $0x70] sm:$0xff]  ;;  %v769_v18 = vmul.f32 %v2609_v31, %v2408_v62 }
  0xf3   :  { %v1402_v30 = vpop.eup %1401  ;;  %v714_v38 = vsub.f32 1.5, %v713_v42  ;;  %v768_v25 = vmul.f32 %v2626_v3, %v2415_v11  ;;  %v753_v62 = vld [vmem:[%s3572_s2 + $0x18] sm:$0xff]  ;;  %v782_v31 = vsub.f32 %v752_v15, %v767_v14  ;;  %v770_v11 = vmul.f32 %v2669_v43, %v2404_v39  ;;  %v760_v39 = vld [vmem:[%s3572_s2 + $0x50] sm:$0xff]  ;;  %v758_v43 = vld [vmem:[%s3572_s2 + $0x40] sm:$0xff] }
  0xf4   :  { %v691_v35 = vmul.f32 %v1402_v30, %v2663_v4  ;;  %847 = vperm.xlu0 %1370, %v2697_v29   ;;  %v669_v9 = vsel %vm668_vm3, %v1396_v47, %v665_v13  ;;  %v703_v5 = vmul.f32 0.5, %v702_v37  ;;  %837 = vperm.xlu2 %1372, %v2709_v63   ;;  %vm697_vm10 = vweird.f32 %v1402_v30 }
  0xf5   :  { %v2711_v57 = vmul.f32 %v729_v12, %v669_v9  ;;  %vm698_vm12 = vmor %vm696_vm11, %vm697_vm10  ;;  %v715_v8 = vmul.f32 %v2666_v32, %v714_v38  ;;  %v766_v4 = vmul.f32 %v2565_v45, %v2396_v55  ;;  %v750_v55 = vld [vmem:[%s3572_s2] sm:$0xff]  ;;  %v783_v56 = vsub.f32 %v753_v62, %v768_v25 }
  0xf6   :  { %v692_v59 = vmul.f32 %v1402_v30, %v691_v35  ;;  %v704_v17 = vsub.f32 1.5, %v703_v5  ;;  %v780_v33 = vsub.f32 %v750_v55, %v765_v51  ;;  %v772_v13 = vmul.f32 %v2647_v46, %v2421_v24  ;;  %v756_v24 = vld [vmem:[%s3572_s2 + $0x30] sm:$0xff] }
  0xf7   :  { %842 = vperm.xlu1 %1371, %v2711_v57   ;;  %v781_v23 = vsub.f32 %v751_v54, %v766_v4  ;;  %v771_v3 = vmul.f32 %v2683_v16, %v2426_v19  ;;  %v785_v46 = vsub.f32 %v755_v58, %v770_v11  ;;  %v775_v37 = vmul.f32 %v2697_v29, %v2432_v61  ;;  %v759_v61 = vld [vmem:[%s3572_s2 + $0x48] sm:$0xff] }
  0xf8   :  { %v693_v48 = vmul.f32 0.5, %v692_v59  ;;  %v705_v47 = vmul.f32 %v1400_v21, %v704_v17  ;;  %v787_v12 = vsub.f32 %v757_v28, %v772_v13  ;;  %v773_v19 = vmul.f32 %v2709_v63, %v2417_v41  ;;  %v763_v41 = vld [vmem:[%s3572_s2 + $0x68] sm:$0xff]  ;;  %v762_v59 = vld [vmem:[%s3572_s2 + $0x60] sm:$0xff] }
  0xf9   :  { %v774_v16 = vmul.f32 %v2711_v57, %v2443_v6  ;;  %v790_v35 = vsub.f32 %v760_v39, %v775_v37  ;;  %v776_v63 = vmul.f32 %v746_v60, %v2430_v50  ;;  %v761_v6 = vld [vmem:[%s3572_s2 + $0x58] sm:$0xff]  ;;  %v764_v50 = vld [vmem:[%s3572_s2 + $0x70] sm:$0xff]  ;;  %v1406_v54 = vld [vmem:[%s3570_s0 + $0x88] sm:$0xff] }
  0xfa   :  { %v694_v22 = vsub.f32 1.5, %v693_v48  ;;  %v709_v7 = vsel %vm708_vm9, %v1400_v21, %v705_v47  ;;  %v719_v21 = vsel %vm718_vm15, %v2666_v32, %v715_v8  ;;  %v754_v32 = vld [vmem:[%s3572_s2 + $0x20] sm:$0xff]  ;;  %v788_v29 = vsub.f32 %v758_v43, %v773_v19  ;;  %v1412_v19 = vld [vmem:[%s3570_s0 + $0x128] sm:$0xff] }
  0xfb   :  { %v748_v34 = vmul.f32 %v733_v53, %v709_v7  ;;  %v749_v45 = vmul.f32 %v734_v2, %v719_v21  ;;  %v784_v44 = vsub.f32 %v754_v32, %v769_v18  ;;  %v789_v9 = vsub.f32 %v759_v61, %v774_v16  ;;  %v1407_v2 = vld [vmem:[%s3570_s0 + $0x90] sm:$0xff]  ;;  %v1411_v37 = vld [vmem:[%s3570_s0 + $0x120] sm:$0xff] }
  0xfc   :  { %v695_v10 = vmul.f32 %v1402_v30, %v694_v22  ;;  %852 = vperm.xlu2 %1372, %v746_v60   ;;  %v791_v36 = vsub.f32 %v761_v6, %v776_v63  ;;  %v1413_v16 = vld [vmem:[%s3570_s0 + $0x130] sm:$0xff]  ;;  %v1416_v63 = vld [vmem:[%s3570_s0 + $0x148] sm:$0xff] }
  0xfd   :  { %862 = vperm.xlu0 %1370, %v748_v34   ;;  %v778_v5 = vmul.f32 %v748_v34, %v2463_v40  ;;  %v779_v17 = vmul.f32 %v749_v45, %v2449_v26 }
  0xfe   :  { %v699_v0 = vsel %vm698_vm12, %v1402_v30, %v695_v10  ;;  %v786_v30 = vsub.f32 %v756_v24, %v771_v3  ;;  %v1410_v24 = vld [vmem:[%s3570_s0 + $0x118] sm:$0xff] }
  0xff   :  { %v747_v27 = vmul.f32 %v732_v20, %v699_v0  ;;  %v793_v42 = vsub.f32 %v763_v41, %v778_v5  ;;  %v794_v48 = vsub.f32 %v764_v50, %v779_v17  ;;  %v1403_v20 = vld [vmem:[%s3570_s0 + $0x70] sm:$0xff]  ;;  %v1404_v0 = vld [vmem:[%s3570_s0 + $0x78] sm:$0xff]  ;;  %v1415_v5 = vld [vmem:[%s3570_s0 + $0x140] sm:$0xff] }
 0x101   :  { %857 = vperm.xlu1 %1371, %v747_v27   ;;  %v777_v57 = vmul.f32 %v747_v27, %v2476_v49  ;;  %v1405_v27 = vld [vmem:[%s3570_s0 + $0x80] sm:$0xff] }
 0x103   :  { %v792_v40 = vsub.f32 %v762_v59, %v777_v57 }
 0x104   :  { %867 = vperm.xlu2 %1372, %v749_v45   ;;  %v1409_v45 = vld [vmem:[%s3570_s0 + $0xa0] sm:$0xff] }
 0x105   :  { %982 = vperm.xlu0 %1370, %v781_v23   ;;  %v1408_v23 = vld [vmem:[%s3570_s0 + $0x98] sm:$0xff] }
 0x109   :  { %977 = vperm.xlu1 %1371, %v780_v33  }
 0x10c   :  { %987 = vperm.xlu2 %1372, %v782_v31  }
 0x10d   :  { %997 = vperm.xlu0 %1370, %v784_v44  }
 0x111   :  { %992 = vperm.xlu1 %1371, %v783_v56  }
 0x114   :  { %1002 = vperm.xlu2 %1372, %v785_v46  }
 0x115   :  { %1012 = vperm.xlu0 %1370, %v787_v12  }
 0x119   :  { %1007 = vperm.xlu1 %1371, %v786_v30  }
 0x11c   :  { %1017 = vperm.xlu2 %1372, %v788_v29   ;;  %v1414_v29 = vld [vmem:[%s3570_s0 + $0x138] sm:$0xff] }
 0x11d   :  { %1027 = vperm.xlu0 %1370, %v790_v35  }
 0x121   :  { %1022 = vperm.xlu1 %1371, %v789_v9  }
 0x124   :  { %1032 = vperm.xlu2 %1372, %v791_v36  }
 0x125   :  { %1042 = vperm.xlu0 %1370, %v793_v42  }
 0x129   :  { %1037 = vperm.xlu1 %1371, %v792_v40  }
 0x12c   :  { %1047 = vperm.xlu2 %1372, %v794_v48  }
 0x132   :  { %v808_v47 = vpop.permute.xlu2 %807 }
 0x133   :  { %v884_v60 = vmul.f32 %v1403_v20, %v808_v47  ;;  %v885_v8 = vmul.f32 %v1404_v0, %v808_v47  ;;  %v886_v4 = vmul.f32 %v1405_v27, %v808_v47  ;;  %v887_v21 = vmul.f32 %v1406_v54, %v808_v47  ;;  %v1417_v27 = vld [vmem:[%s3570_s0 + $0x1c0] sm:$0xff] }
 0x134   :  { %v888_v51 = vmul.f32 %v1407_v2, %v808_v47  ;;  %v889_v55 = vmul.f32 %v1408_v23, %v808_v47  ;;  %v890_v33 = vmul.f32 %v1409_v45, %v808_v47  ;;  %v1418_v2 = vld [vmem:[%s3570_s0 + $0x1c8] sm:$0xff]  ;;  %v1419_v23 = vld [vmem:[%s3570_s0 + $0x1d0] sm:$0xff]  ;;  %v1420_v45 = vld [vmem:[%s3570_s0 + $0x1d8] sm:$0xff] }
 0x13e   :  { %v2808_v49 = vpop.permute.xlu2 %812 }
 0x146   :  { %v823_v53 = vpop.permute.xlu2 %822 }
 0x147   :  { %v905_v46 = vmul.f32 %v1410_v24, %v823_v53  ;;  %v906_v39 = vmul.f32 %v1411_v37, %v823_v53  ;;  %v907_v43 = vmul.f32 %v1412_v19, %v823_v53  ;;  %v908_v35 = vmul.f32 %v1413_v16, %v823_v53 }
 0x148   :  { %v909_v9 = vmul.f32 %v1414_v29, %v823_v53  ;;  %v910_v41 = vmul.f32 %v1415_v5, %v823_v53  ;;  %v911_v6 = vmul.f32 %v1416_v63, %v823_v53 }
 0x14a   :  { %v2810_v38 = vpop.permute.xlu1 %802 }
 0x14e   :  { %v2812_v22 = vpop.permute.xlu2 %837  ;;  %v2818_v7 = vpop.permute.xlu0 %797 }
 0x152   :  { %v2814_v52 = vpop.permute.xlu1 %817 }
 0x156   :  { %v2816_v1 = vpop.permute.xlu2 %852 }
 0x15b   :  { %v2824_v10 = vpop.permute.xlu0 %832 }
 0x15e   :  { %v2820_v26 = vpop.permute.xlu2 %867 }
 0x15f   :  { %v2822_v34 = vpop.permute.xlu1 %827 }
 0x166   :  { %v988_v18 = vpop.permute.xlu2 %987  ;;  %v2849_v3 = vpop.permute.xlu0 %847 }
 0x167   :  { %v1064_v32 = vadd.f32 %v988_v18, %v884_v60  ;;  %v1065_v14 = vadd.f32 %v988_v18, %v885_v8  ;;  %v1066_v15 = vadd.f32 %v988_v18, %v886_v4  ;;  %v1067_v25 = vadd.f32 %v988_v18, %v887_v21 }
 0x168   :  { %v1068_v44 = vadd.f32 %v988_v18, %v888_v51  ;;  %v1069_v62 = vadd.f32 %v988_v18, %v889_v55  ;;  %v1070_v56 = vadd.f32 %v988_v18, %v890_v33  ;;  %v926_v4 = vmul.f32 %v1417_v27, %v2812_v22 }
 0x169   :  { %v2847_v31 = vpop.permute.xlu1 %842  ;;  %v1169_v13 = vmax.f32 %v1064_v32, 0.0  ;;  %v1170_v28 = vmax.f32 %v1065_v14, 0.0  ;;  %v1171_v11 = vmax.f32 %v1066_v15, 0.0  ;;  %v1172_v58 = vmax.f32 %v1067_v25, 0.0  ;;  %v1421_v32 = vld [vmem:[%s3570_s0 + $0x1e0] sm:$0xff]  ;;  %v1422_v15 = vld [vmem:[%s3570_s0 + $0x1e8] sm:$0xff] }
 0x16a   :  { %v1173_v12 = vmax.f32 %v1068_v44, 0.0  ;;  %v1174_v30 = vmax.f32 %v1069_v62, 0.0  ;;  %v1175_v61 = vmax.f32 %v1070_v56, 0.0  ;;  %v927_v51 = vmul.f32 %v1418_v2, %v2812_v22  ;;  %v1423_v44 = vld [vmem:[%s3570_s0 + $0x1f0] sm:$0xff] }
 0x16b   :  { %1274 = vst [vmem:[%s3573_s3 + $0x70] sm:$0xff] %v1169_v13  ;;  %v928_v55 = vmul.f32 %v1419_v23, %v2812_v22  ;;  %v929_v33 = vmul.f32 %v1420_v45, %v2812_v22  ;;  %v930_v14 = vmul.f32 %v1421_v32, %v2812_v22  ;;  %v931_v25 = vmul.f32 %v1422_v15, %v2812_v22  ;;  %v1434_v15 = vld [vmem:[%s3570_s0 + $0x50] sm:$0xff] }
 0x16c   :  { %1275 = vst [vmem:[%s3573_s3 + $0x78] sm:$0xff] %v1170_v28  ;;  %v932_v62 = vmul.f32 %v1423_v44, %v2812_v22  ;;  %v1425_v22 = vld [vmem:[%s3570_s0 + $0x8] sm:$0xff] }
 0x16d   :  { %1276 = vst [vmem:[%s3573_s3 + $0x80] sm:$0xff] %v1171_v11 }
 0x16e   :  { %1277 = vst [vmem:[%s3573_s3 + $0x88] sm:$0xff] %v1172_v58  ;;  %v1003_v57 = vpop.permute.xlu2 %1002 }
 0x16f   :  { %1278 = vst [vmem:[%s3573_s3 + $0x90] sm:$0xff] %v1173_v12  ;;  %v1085_v42 = vadd.f32 %v1003_v57, %v905_v46  ;;  %v1086_v59 = vadd.f32 %v1003_v57, %v906_v39  ;;  %v1087_v36 = vadd.f32 %v1003_v57, %v907_v43  ;;  %v1088_v40 = vadd.f32 %v1003_v57, %v908_v35  ;;  %v2906_v21 = vpop.permute.xlu0 %862  ;;  %v1424_v12 = vld [vmem:[%s3570_s0] sm:$0xff] }
 0x170   :  { %1279 = vst [vmem:[%s3573_s3 + $0x98] sm:$0xff] %v1174_v30  ;;  %v1089_v17 = vadd.f32 %v1003_v57, %v909_v9  ;;  %v1090_v50 = vadd.f32 %v1003_v57, %v910_v41  ;;  %v1091_v47 = vadd.f32 %v1003_v57, %v911_v6  ;;  %v870_v24 = vmul.f32 %v1424_v12, %v2818_v7  ;;  %v1427_v41 = vld [vmem:[%s3570_s0 + $0x18] sm:$0xff] }
 0x171   :  { %1280 = vst.msk [vmem:[%s3573_s3 + $0xa0] sm:$0xff] %vm124_vm0, %v1175_v61  ;;  %v1190_v53 = vmax.f32 %v1085_v42, 0.0  ;;  %v1191_v20 = vmax.f32 %v1086_v59, 0.0  ;;  %v1192_v60 = vmax.f32 %v1087_v36, 0.0  ;;  %v1193_v0 = vmax.f32 %v1088_v40, 0.0  ;;  %v1426_v61 = vld [vmem:[%s3570_s0 + $0x10] sm:$0xff] }
 0x172   :  { %v1194_v8 = vmax.f32 %v1089_v17, 0.0  ;;  %v1195_v54 = vmax.f32 %v1090_v50, 0.0  ;;  %v1196_v18 = vmax.f32 %v1091_v47, 0.0  ;;  %v871_v46 = vmul.f32 %v1425_v22, %v2818_v7  ;;  %v1428_v42 = vld [vmem:[%s3570_s0 + $0x20] sm:$0xff]  ;;  %v1429_v17 = vld [vmem:[%s3570_s0 + $0x28] sm:$0xff] }
 0x173   :  { %v2890_v48 = vpop.permute.xlu1 %857  ;;  %1295 = vst [vmem:[%s3573_s3 + $0x118] sm:$0xff] %v1190_v53  ;;  %v872_v29 = vmul.f32 %v1426_v61, %v2818_v7  ;;  %v873_v63 = vmul.f32 %v1427_v41, %v2818_v7  ;;  %v874_v59 = vmul.f32 %v1428_v42, %v2818_v7  ;;  %v875_v50 = vmul.f32 %v1429_v17, %v2818_v7  ;;  %v1440_v41 = vld [vmem:[%s3570_s0 + $0x278] sm:$0xff]  ;;  %v1441_v42 = vld [vmem:[%s3570_s0 + $0x280] sm:$0xff]  ;;  %v1442_v17 = vld [vmem:[%s3570_s0 + $0x288] sm:$0xff] }
 0x174   :  { %1296 = vst [vmem:[%s3573_s3 + $0x120] sm:$0xff] %v1191_v20  ;;  %v1430_v20 = vld [vmem:[%s3570_s0 + $0x30] sm:$0xff] }
 0x175   :  { %1297 = vst [vmem:[%s3573_s3 + $0x128] sm:$0xff] %v1192_v60  ;;  %v876_v60 = vmul.f32 %v1430_v20, %v2818_v7  ;;  %v1432_v7 = vld [vmem:[%s3570_s0 + $0x40] sm:$0xff]  ;;  %v1443_v20 = vld [vmem:[%s3570_s0 + $0x290] sm:$0xff] }
 0x176   :  { %1298 = vst [vmem:[%s3573_s3 + $0x130] sm:$0xff] %v1193_v0  ;;  %v1018_v56 = vpop.permute.xlu2 %1017  ;;  %v878_v23 = vmul.f32 %v1432_v7, %v2810_v38  ;;  %v1445_v7 = vld [vmem:[%s3570_s0 + $0xa8] sm:$0xff] }
 0x177   :  { %1299 = vst [vmem:[%s3573_s3 + $0x138] sm:$0xff] %v1194_v8  ;;  %v1106_v13 = vadd.f32 %v1018_v56, %v926_v4  ;;  %v1107_v28 = vadd.f32 %v1018_v56, %v927_v51  ;;  %v1108_v11 = vadd.f32 %v1018_v56, %v928_v55  ;;  %v1109_v58 = vadd.f32 %v1018_v56, %v929_v33  ;;  %v983_v27 = vpop.permute.xlu0 %982  ;;  %v1431_v4 = vld [vmem:[%s3570_s0 + $0x38] sm:$0xff]  ;;  %v1433_v33 = vld [vmem:[%s3570_s0 + $0x48] sm:$0xff] }
 0x178   :  { %1300 = vst [vmem:[%s3573_s3 + $0x140] sm:$0xff] %v1195_v54  ;;  %v1110_v30 = vadd.f32 %v1018_v56, %v930_v14  ;;  %v1111_v37 = vadd.f32 %v1018_v56, %v931_v25  ;;  %v1112_v19 = vadd.f32 %v1018_v56, %v932_v62  ;;  %v877_v54 = vmul.f32 %v1431_v4, %v2810_v38  ;;  %v1435_v56 = vld [vmem:[%s3570_s0 + $0x58] sm:$0xff] }
 0x179   :  { %1301 = vst.msk [vmem:[%s3573_s3 + $0x148] sm:$0xff] %vm124_vm0, %v1196_v18  ;;  %v1211_v43 = vmax.f32 %v1106_v13, 0.0  ;;  %v1212_v16 = vmax.f32 %v1107_v28, 0.0  ;;  %v1213_v35 = vmax.f32 %v1108_v11, 0.0  ;;  %v1214_v9 = vmax.f32 %v1109_v58, 0.0  ;;  %v1436_v58 = vld [vmem:[%s3570_s0 + $0x60] sm:$0xff] }
 0x17a   :  { %v1215_v6 = vmax.f32 %v1110_v30, 0.0  ;;  %v1216_v36 = vmax.f32 %v1111_v37, 0.0  ;;  %v1217_v47 = vmax.f32 %v1112_v19, 0.0  ;;  %v879_v18 = vmul.f32 %v1433_v33, %v2810_v38 }
 0x17b   :  { %v978_v39 = vpop.permute.xlu1 %977  ;;  %1316 = vst [vmem:[%s3573_s3 + $0x1c0] sm:$0xff] %v1211_v43  ;;  %v1057_v14 = vadd.f32 %v983_v27, %v877_v54  ;;  %v880_v25 = vmul.f32 %v1434_v15, %v2810_v38  ;;  %v1058_v62 = vadd.f32 %v983_v27, %v878_v23  ;;  %v881_v13 = vmul.f32 %v1435_v56, %v2810_v38  ;;  %v1438_v43 = vld [vmem:[%s3570_s0 + $0x268] sm:$0xff] }
 0x17c   :  { %v1050_v5 = vadd.f32 %v978_v39, %v870_v24  ;;  %v1051_v57 = vadd.f32 %v978_v39, %v871_v46  ;;  %1317 = vst [vmem:[%s3573_s3 + $0x1c8] sm:$0xff] %v1212_v16  ;;  %v1052_v40 = vadd.f32 %v978_v39, %v872_v29  ;;  %v1053_v53 = vadd.f32 %v978_v39, %v873_v63  ;;  %v1437_v46 = vld [vmem:[%s3570_s0 + $0x68] sm:$0xff] }
 0x17d   :  { %1318 = vst [vmem:[%s3573_s3 + $0x1d0] sm:$0xff] %v1213_v35  ;;  %v1054_v0 = vadd.f32 %v978_v39, %v874_v59  ;;  %v1055_v2 = vadd.f32 %v978_v39, %v875_v50  ;;  %v1056_v55 = vadd.f32 %v978_v39, %v876_v60  ;;  %v1059_v11 = vadd.f32 %v983_v27, %v879_v18 }
 0x17e   :  { %1319 = vst [vmem:[%s3573_s3 + $0x1d8] sm:$0xff] %v1214_v9  ;;  %v1155_v8 = vmax.f32 %v1050_v5, 0.0  ;;  %v1156_v51 = vmax.f32 %v1051_v57, 0.0  ;;  %v1157_v45 = vmax.f32 %v1052_v40, 0.0  ;;  %v1158_v32 = vmax.f32 %v1053_v53, 0.0  ;;  %v1033_v19 = vpop.permute.xlu2 %1032 }
 0x17f   :  { %1320 = vst [vmem:[%s3573_s3 + $0x1e0] sm:$0xff] %v1215_v6  ;;  %v1159_v44 = vmax.f32 %v1054_v0, 0.0  ;;  %v1160_v28 = vmax.f32 %v1055_v2, 0.0  ;;  %v882_v12 = vmul.f32 %v1436_v58, %v2810_v38  ;;  %v1161_v24 = vmax.f32 %v1056_v55, 0.0 }
 0x180   :  { %1321 = vst [vmem:[%s3573_s3 + $0x1e8] sm:$0xff] %v1216_v36  ;;  %v1060_v22 = vadd.f32 %v983_v27, %v880_v25  ;;  %v883_v30 = vmul.f32 %v1437_v46, %v2810_v38  ;;  %v1061_v37 = vadd.f32 %v983_v27, %v881_v13  ;;  %v1162_v39 = vmax.f32 %v1057_v14, 0.0  ;;  %v1439_v38 = vld [vmem:[%s3570_s0 + $0x270] sm:$0xff]  ;;  %v1447_v14 = vld [vmem:[%s3570_s0 + $0xb8] sm:$0xff] }
 0x181   :  { %1322 = vst.msk [vmem:[%s3573_s3 + $0x1f0] sm:$0xff] %vm124_vm0, %v1217_v47  ;;  %v947_v16 = vmul.f32 %v1438_v43, %v2816_v1  ;;  %v1062_v35 = vadd.f32 %v983_v27, %v882_v12  ;;  %v1163_v61 = vmax.f32 %v1058_v62, 0.0  ;;  %v948_v29 = vmul.f32 %v1439_v38, %v2816_v1  ;;  %v1448_v62 = vld [vmem:[%s3570_s0 + $0xc0] sm:$0xff] }
 0x182   :  { %1260 = vst [vmem:[%s3573_s3] sm:$0xff] %v1155_v8  ;;  %v1063_v9 = vadd.f32 %v983_v27, %v883_v30  ;;  %v1164_v5 = vmax.f32 %v1059_v11, 0.0  ;;  %v949_v63 = vmul.f32 %v1440_v41, %v2816_v1  ;;  %v1165_v6 = vmax.f32 %v1060_v22, 0.0  ;;  %v1444_v27 = vld [vmem:[%s3570_s0 + $0x298] sm:$0xff]  ;;  %v1449_v11 = vld [vmem:[%s3570_s0 + $0xc8] sm:$0xff]  ;;  %v1450_v22 = vld [vmem:[%s3570_s0 + $0xd0] sm:$0xff] }
 0x183   :  { %1261 = vst [vmem:[%s3573_s3 + $0x8] sm:$0xff] %v1156_v51  ;;  %v1127_v57 = vadd.f32 %v1033_v19, %v947_v16  ;;  %v950_v59 = vmul.f32 %v1441_v42, %v2816_v1  ;;  %v1166_v36 = vmax.f32 %v1061_v37, 0.0  ;;  %v1128_v40 = vadd.f32 %v1033_v19, %v948_v29  ;;  %v993_v51 = vpop.permute.xlu1 %992 }
 0x184   :  { %1262 = vst [vmem:[%s3573_s3 + $0x10] sm:$0xff] %v1157_v45  ;;  %v951_v50 = vmul.f32 %v1442_v17, %v2816_v1  ;;  %v1167_v47 = vmax.f32 %v1062_v35, 0.0  ;;  %v1129_v53 = vadd.f32 %v1033_v19, %v949_v63  ;;  %v952_v60 = vmul.f32 %v1443_v20, %v2816_v1  ;;  %v998_v35 = vpop.permute.xlu0 %997 }
 0x185   :  { %1263 = vst [vmem:[%s3573_s3 + $0x18] sm:$0xff] %v1158_v32  ;;  %v1168_v0 = vmax.f32 %v1063_v9, 0.0  ;;  %v1130_v8 = vadd.f32 %v1033_v19, %v950_v59  ;;  %v953_v4 = vmul.f32 %v1444_v27, %v2816_v1  ;;  %v1232_v2 = vmax.f32 %v1127_v57, 0.0  ;;  %v1446_v1 = vld [vmem:[%s3570_s0 + $0xb0] sm:$0xff] }
 0x186   :  { %1264 = vst [vmem:[%s3573_s3 + $0x20] sm:$0xff] %v1159_v44  ;;  %v1131_v54 = vadd.f32 %v1033_v19, %v951_v50  ;;  %v891_v23 = vmul.f32 %v1445_v7, %v2808_v49  ;;  %v1132_v55 = vadd.f32 %v1033_v19, %v952_v60  ;;  %v1233_v45 = vmax.f32 %v1128_v40, 0.0 }
 0x187   :  { %1265 = vst [vmem:[%s3573_s3 + $0x28] sm:$0xff] %v1160_v28  ;;  %v892_v33 = vmul.f32 %v1446_v1, %v2808_v49  ;;  %v1133_v18 = vadd.f32 %v1033_v19, %v953_v4  ;;  %v1234_v32 = vmax.f32 %v1129_v53, 0.0  ;;  %v893_v15 = vmul.f32 %v1447_v14, %v2808_v49  ;;  %v1459_v1 = vld [vmem:[%s3570_s0 + $0x310] sm:$0xff] }
 0x188   :  { %1266 = vst.msk [vmem:[%s3573_s3 + $0x30] sm:$0xff] %vm124_vm0, %v1161_v24  ;;  %v1235_v25 = vmax.f32 %v1130_v8, 0.0  ;;  %v1071_v44 = vadd.f32 %v993_v51, %v891_v23  ;;  %v894_v56 = vmul.f32 %v1448_v62, %v2808_v49  ;;  %v1236_v13 = vmax.f32 %v1131_v54, 0.0  ;;  %v1458_v54 = vld [vmem:[%s3570_s0 + $0x110] sm:$0xff]  ;;  %v1048_v23 = vpop.permute.xlu2 %1047 }
 0x189   :  { %1267 = vst [vmem:[%s3573_s3 + $0x38] sm:$0xff] %v1162_v39  ;;  %v1072_v28 = vadd.f32 %v993_v51, %v892_v33  ;;  %v895_v58 = vmul.f32 %v1449_v11, %v2808_v49  ;;  %v1237_v12 = vmax.f32 %v1132_v55, 0.0  ;;  %v1073_v24 = vadd.f32 %v993_v51, %v893_v15  ;;  %v1451_v39 = vld [vmem:[%s3570_s0 + $0xd8] sm:$0xff] }
 0x18a   :  { %1268 = vst [vmem:[%s3573_s3 + $0x40] sm:$0xff] %v1163_v61  ;;  %v896_v46 = vmul.f32 %v1450_v22, %v2808_v49  ;;  %v1238_v30 = vmax.f32 %v1133_v18, 0.0  ;;  %v1074_v37 = vadd.f32 %v993_v51, %v894_v56  ;;  %v897_v19 = vmul.f32 %v1451_v39, %v2808_v49  ;;  %v1452_v61 = vld [vmem:[%s3570_s0 + $0xe0] sm:$0xff]  ;;  %v1453_v49 = vld [vmem:[%s3570_s0 + $0xe8] sm:$0xff] }
 0x18b   :  { %1269 = vst [vmem:[%s3573_s3 + $0x48] sm:$0xff] %v1164_v5  ;;  %v1075_v43 = vadd.f32 %v993_v51, %v895_v58  ;;  %v1176_v16 = vmax.f32 %v1071_v44, 0.0  ;;  %v898_v38 = vmul.f32 %v1452_v61, %v2814_v52  ;;  %v1177_v9 = vmax.f32 %v1072_v28, 0.0  ;;  %v1008_v61 = vpop.permute.xlu1 %1007 }
 0x18c   :  { %1270 = vst [vmem:[%s3573_s3 + $0x50] sm:$0xff] %v1165_v6  ;;  %v1076_v29 = vadd.f32 %v993_v51, %v896_v46  ;;  %v899_v5 = vmul.f32 %v1453_v49, %v2814_v52  ;;  %v1077_v41 = vadd.f32 %v993_v51, %v897_v19  ;;  %v1178_v63 = vmax.f32 %v1073_v24, 0.0  ;;  %v1454_v6 = vld [vmem:[%s3570_s0 + $0xf0] sm:$0xff]  ;;  %v1465_v19 = vld [vmem:[%s3570_s0 + $0x340] sm:$0xff] }
 0x18d   :  { %1271 = vst [vmem:[%s3573_s3 + $0x58] sm:$0xff] %v1166_v36  ;;  %v900_v57 = vmul.f32 %v1454_v6, %v2814_v52  ;;  %v1179_v42 = vmax.f32 %v1074_v37, 0.0  ;;  %v1078_v59 = vadd.f32 %v998_v35, %v898_v38  ;;  %v1455_v36 = vld [vmem:[%s3570_s0 + $0xf8] sm:$0xff]  ;;  %v1180_v17 = vmax.f32 %v1075_v43, 0.0  ;;  %v1466_v38 = vld [vmem:[%s3570_s0 + $0x150] sm:$0xff]  ;;  %v1468_v6 = vld [vmem:[%s3570_s0 + $0x160] sm:$0xff] }
 0x18e   :  { %1272 = vst [vmem:[%s3573_s3 + $0x60] sm:$0xff] %v1167_v47  ;;  %v901_v40 = vmul.f32 %v1455_v36, %v2814_v52  ;;  %v1079_v50 = vadd.f32 %v998_v35, %v899_v5  ;;  %v1456_v47 = vld [vmem:[%s3570_s0 + $0x100] sm:$0xff]  ;;  %v1181_v20 = vmax.f32 %v1076_v29, 0.0  ;;  %v1182_v27 = vmax.f32 %v1077_v41, 0.0  ;;  %v1467_v5 = vld [vmem:[%s3570_s0 + $0x158] sm:$0xff]  ;;  %v1469_v36 = vld [vmem:[%s3570_s0 + $0x168] sm:$0xff] }
 0x18f   :  { %1273 = vst.msk [vmem:[%s3573_s3 + $0x68] sm:$0xff] %vm124_vm0, %v1168_v0  ;;  %v902_v53 = vmul.f32 %v1456_v47, %v2814_v52  ;;  %v1080_v60 = vadd.f32 %v998_v35, %v900_v57  ;;  %v1457_v0 = vld [vmem:[%s3570_s0 + $0x108] sm:$0xff]  ;;  %v1183_v7 = vmax.f32 %v1078_v59, 0.0  ;;  %v968_v33 = vmul.f32 %v1459_v1, %v2820_v26  ;;  %v1470_v47 = vld [vmem:[%s3570_s0 + $0x170] sm:$0xff] }
 0x190   :  { %1337 = vst [vmem:[%s3573_s3 + $0x268] sm:$0xff] %v1232_v2  ;;  %v903_v8 = vmul.f32 %v1457_v0, %v2814_v52  ;;  %v1081_v4 = vadd.f32 %v998_v35, %v901_v40  ;;  %v904_v2 = vmul.f32 %v1458_v54, %v2814_v52  ;;  %v974_v43 = vmul.f32 %v1465_v19, %v2820_v26  ;;  %v1471_v0 = vld [vmem:[%s3570_s0 + $0x178] sm:$0xff]  ;;  %v1472_v54 = vld [vmem:[%s3570_s0 + $0x180] sm:$0xff] }
 0x191   :  { %1338 = vst [vmem:[%s3573_s3 + $0x270] sm:$0xff] %v1233_v45  ;;  %v1082_v51 = vadd.f32 %v998_v35, %v902_v53  ;;  %v1184_v45 = vmax.f32 %v1079_v50, 0.0  ;;  %v1185_v18 = vmax.f32 %v1080_v60, 0.0  ;;  %v1148_v62 = vadd.f32 %v1048_v23, %v968_v33 }
 0x192   :  { %1339 = vst [vmem:[%s3573_s3 + $0x278] sm:$0xff] %v1234_v32  ;;  %v1083_v55 = vadd.f32 %v998_v35, %v903_v8  ;;  %v1084_v52 = vadd.f32 %v998_v35, %v904_v2  ;;  %v1460_v32 = vld [vmem:[%s3570_s0 + $0x318] sm:$0xff]  ;;  %v1186_v15 = vmax.f32 %v1081_v4, 0.0  ;;  %v912_v29 = vmul.f32 %v1466_v38, %v2822_v34 }
 0x193   :  { %1340 = vst [vmem:[%s3573_s3 + $0x280] sm:$0xff] %v1235_v25  ;;  %v969_v14 = vmul.f32 %v1460_v32, %v2820_v26  ;;  %v1461_v25 = vld [vmem:[%s3570_s0 + $0x320] sm:$0xff]  ;;  %v1187_v56 = vmax.f32 %v1082_v51, 0.0  ;;  %v1253_v35 = vmax.f32 %v1148_v62, 0.0  ;;  %v1154_v41 = vadd.f32 %v1048_v23, %v974_v43 }
 0x194   :  { %1341 = vst [vmem:[%s3573_s3 + $0x288] sm:$0xff] %v1236_v13  ;;  %v970_v44 = vmul.f32 %v1461_v25, %v2820_v26  ;;  %v1462_v13 = vld [vmem:[%s3570_s0 + $0x328] sm:$0xff]  ;;  %v1188_v58 = vmax.f32 %v1083_v55, 0.0  ;;  %v1189_v46 = vmax.f32 %v1084_v52, 0.0  ;;  %v914_v57 = vmul.f32 %v1468_v6, %v2822_v34  ;;  %v1476_v62 = vld [vmem:[%s3570_s0 + $0x1a0] sm:$0xff] }
 0x195   :  { %1342 = vst [vmem:[%s3573_s3 + $0x290] sm:$0xff] %v1237_v12  ;;  %v971_v28 = vmul.f32 %v1462_v13, %v2820_v26  ;;  %v1149_v11 = vadd.f32 %v1048_v23, %v969_v14  ;;  %v1463_v12 = vld [vmem:[%s3570_s0 + $0x330] sm:$0xff]  ;;  %v1092_v59 = vadd.f32 %v1008_v61, %v912_v29  ;;  %v915_v40 = vmul.f32 %v1469_v36, %v2822_v34  ;;  %v1473_v55 = vld [vmem:[%s3570_s0 + $0x188] sm:$0xff]  ;;  %v1475_v14 = vld [vmem:[%s3570_s0 + $0x198] sm:$0xff] }
 0x196   :  { %1343 = vst.msk [vmem:[%s3573_s3 + $0x298] sm:$0xff] %vm124_vm0, %v1238_v30  ;;  %v972_v24 = vmul.f32 %v1463_v12, %v2820_v26  ;;  %v1150_v22 = vadd.f32 %v1048_v23, %v970_v44  ;;  %v1464_v30 = vld [vmem:[%s3570_s0 + $0x338] sm:$0xff]  ;;  %v916_v53 = vmul.f32 %v1470_v47, %v2822_v34  ;;  %v1094_v60 = vadd.f32 %v1008_v61, %v914_v57 }
 0x197   :  { %1281 = vst [vmem:[%s3573_s3 + $0xa8] sm:$0xff] %v1176_v16  ;;  %v973_v37 = vmul.f32 %v1464_v30, %v2820_v26  ;;  %v1151_v39 = vadd.f32 %v1048_v23, %v971_v28  ;;  %v1254_v49 = vmax.f32 %v1149_v11, 0.0  ;;  %v913_v26 = vmul.f32 %v1467_v5, %v2822_v34  ;;  %v1477_v11 = vld [vmem:[%s3570_s0 + $0x1a8] sm:$0xff] }
 0x198   :  { %1282 = vst [vmem:[%s3573_s3 + $0xb0] sm:$0xff] %v1177_v9  ;;  %v1152_v16 = vadd.f32 %v1048_v23, %v972_v24  ;;  %v917_v8 = vmul.f32 %v1471_v0, %v2822_v34  ;;  %v1095_v4 = vadd.f32 %v1008_v61, %v915_v40  ;;  %v918_v2 = vmul.f32 %v1472_v54, %v2822_v34  ;;  %v1474_v34 = vld [vmem:[%s3570_s0 + $0x190] sm:$0xff] }
 0x199   :  { %1283 = vst [vmem:[%s3573_s3 + $0xb8] sm:$0xff] %v1178_v63  ;;  %v1153_v9 = vadd.f32 %v1048_v23, %v973_v37  ;;  %v1255_v63 = vmax.f32 %v1150_v22, 0.0  ;;  %v1093_v50 = vadd.f32 %v1008_v61, %v913_v26  ;;  %v1096_v51 = vadd.f32 %v1008_v61, %v916_v53  ;;  %v1013_v23 = vpop.permute.xlu0 %1012  ;;  %v1478_v22 = vld [vmem:[%s3570_s0 + $0x1b0] sm:$0xff] }
 0x19a   :  { %1284 = vst [vmem:[%s3573_s3 + $0xc0] sm:$0xff] %v1179_v42  ;;  %v1256_v42 = vmax.f32 %v1151_v39, 0.0  ;;  %v1097_v1 = vadd.f32 %v1008_v61, %v917_v8  ;;  %v920_v52 = vmul.f32 %v1474_v34, %v2824_v10  ;;  %v1199_v32 = vmax.f32 %v1094_v60, 0.0  ;;  %v1479_v39 = vld [vmem:[%s3570_s0 + $0x1b8] sm:$0xff] }
 0x19b   :  { %1285 = vst [vmem:[%s3573_s3 + $0xc8] sm:$0xff] %v1180_v17  ;;  %v1257_v17 = vmax.f32 %v1152_v16, 0.0  ;;  %v1198_v33 = vmax.f32 %v1093_v50, 0.0  ;;  %v1200_v25 = vmax.f32 %v1095_v4, 0.0  ;;  %v1201_v13 = vmax.f32 %v1096_v51, 0.0 }
 0x19c   :  { %1286 = vst [vmem:[%s3573_s3 + $0xd0] sm:$0xff] %v1181_v20  ;;  %v1258_v20 = vmax.f32 %v1153_v9, 0.0  ;;  %v1100_v28 = vadd.f32 %v1013_v23, %v920_v52  ;;  %v1202_v12 = vmax.f32 %v1097_v1, 0.0  ;;  %v925_v19 = vmul.f32 %v1479_v39, %v2824_v10  ;;  %v1489_v52 = vld [vmem:[%s3570_s0 + $0x240] sm:$0xff] }
 0x19d   :  { %1287 = vst.msk [vmem:[%s3573_s3 + $0xd8] sm:$0xff] %vm124_vm0, %v1182_v27  ;;  %v1259_v27 = vmax.f32 %v1154_v41, 0.0  ;;  %v1482_v41 = vld [vmem:[%s3570_s0 + $0x208] sm:$0xff] }
 0x19e   :  { %1288 = vst [vmem:[%s3573_s3 + $0xe0] sm:$0xff] %v1183_v7  ;;  %v1197_v7 = vmax.f32 %v1092_v59, 0.0  ;;  %v1205_v9 = vmax.f32 %v1100_v28, 0.0  ;;  %v1105_v5 = vadd.f32 %v1013_v23, %v925_v19 }
 0x19f   :  { %1289 = vst [vmem:[%s3573_s3 + $0xe8] sm:$0xff] %v1184_v45  ;;  %v919_v45 = vmul.f32 %v1473_v55, %v2824_v10 }
 0x1a0   :  { %1290 = vst [vmem:[%s3573_s3 + $0xf0] sm:$0xff] %v1185_v18  ;;  %v1098_v18 = vadd.f32 %v1008_v61, %v918_v2  ;;  %v1480_v61 = vld [vmem:[%s3570_s0 + $0x1f8] sm:$0xff]  ;;  %v1210_v0 = vmax.f32 %v1105_v5, 0.0 }
 0x1a1   :  { %1291 = vst [vmem:[%s3573_s3 + $0xf8] sm:$0xff] %v1186_v15  ;;  %v921_v15 = vmul.f32 %v1475_v14, %v2824_v10  ;;  %v1099_v44 = vadd.f32 %v1013_v23, %v919_v45  ;;  %v933_v38 = vmul.f32 %v1480_v61, %v2847_v31  ;;  %v1028_v51 = vpop.permute.xlu0 %1027 }
 0x1a2   :  { %1292 = vst [vmem:[%s3573_s3 + $0x100] sm:$0xff] %v1187_v56  ;;  %v922_v56 = vmul.f32 %v1476_v62, %v2824_v10  ;;  %v1203_v30 = vmax.f32 %v1098_v18, 0.0  ;;  %v942_v18 = vmul.f32 %v1489_v52, %v2849_v3  ;;  %v1504_v52 = vld [vmem:[%s3570_s0 + $0x2f0] sm:$0xff] }
 0x1a3   :  { %1293 = vst [vmem:[%s3573_s3 + $0x108] sm:$0xff] %v1188_v58  ;;  %v923_v58 = vmul.f32 %v1477_v11, %v2824_v10  ;;  %v1101_v24 = vadd.f32 %v1013_v23, %v921_v15  ;;  %v1204_v16 = vmax.f32 %v1099_v44, 0.0  ;;  %v1490_v15 = vld [vmem:[%s3570_s0 + $0x248] sm:$0xff] }
 0x1a4   :  { %1294 = vst.msk [vmem:[%s3573_s3 + $0x110] sm:$0xff] %vm124_vm0, %v1189_v46  ;;  %v924_v46 = vmul.f32 %v1478_v22, %v2824_v10  ;;  %v1102_v37 = vadd.f32 %v1013_v23, %v922_v56  ;;  %v1481_v10 = vld [vmem:[%s3570_s0 + $0x200] sm:$0xff]  ;;  %v1491_v56 = vld [vmem:[%s3570_s0 + $0x250] sm:$0xff]  ;;  %v1122_v11 = vadd.f32 %v1028_v51, %v942_v18  ;;  %v964_v18 = vmul.f32 %v1504_v52, %v2906_v21 }
 0x1a5   :  { %1358 = vst [vmem:[%s3573_s3 + $0x310] sm:$0xff] %v1253_v35  ;;  %v1103_v43 = vadd.f32 %v1013_v23, %v923_v58  ;;  %v1023_v35 = vpop.permute.xlu1 %1022  ;;  %v1206_v26 = vmax.f32 %v1101_v24, 0.0  ;;  %v1492_v58 = vld [vmem:[%s3570_s0 + $0x258] sm:$0xff] }
 0x1a6   :  { %1359 = vst [vmem:[%s3573_s3 + $0x318] sm:$0xff] %v1254_v49  ;;  %v1104_v29 = vadd.f32 %v1013_v23, %v924_v46  ;;  %v934_v49 = vmul.f32 %v1481_v10, %v2847_v31  ;;  %v1207_v6 = vmax.f32 %v1102_v37, 0.0  ;;  %v1113_v57 = vadd.f32 %v1023_v35, %v933_v38  ;;  %v1493_v46 = vld [vmem:[%s3570_s0 + $0x260] sm:$0xff] }
 0x1a7   :  { %1360 = vst [vmem:[%s3573_s3 + $0x320] sm:$0xff] %v1255_v63  ;;  %v935_v63 = vmul.f32 %v1482_v41, %v2847_v31  ;;  %v1208_v36 = vmax.f32 %v1103_v43, 0.0  ;;  %v1227_v38 = vmax.f32 %v1122_v11, 0.0  ;;  %v1507_v11 = vld [vmem:[%s3570_s0 + $0x308] sm:$0xff] }
 0x1a8   :  { %1361 = vst [vmem:[%s3573_s3 + $0x328] sm:$0xff] %v1256_v42  ;;  %v1483_v42 = vld [vmem:[%s3570_s0 + $0x210] sm:$0xff]  ;;  %v1114_v40 = vadd.f32 %v1023_v35, %v934_v49  ;;  %v1209_v47 = vmax.f32 %v1104_v29, 0.0  ;;  %v1218_v2 = vmax.f32 %v1113_v57, 0.0  ;;  %v1495_v29 = vld [vmem:[%s3570_s0 + $0x2a8] sm:$0xff] }
 0x1a9   :  { %1362 = vst [vmem:[%s3573_s3 + $0x330] sm:$0xff] %v1257_v17  ;;  %v936_v59 = vmul.f32 %v1483_v42, %v2847_v31  ;;  %v1484_v17 = vld [vmem:[%s3570_s0 + $0x218] sm:$0xff]  ;;  %v1115_v53 = vadd.f32 %v1023_v35, %v935_v63  ;;  %v1496_v49 = vld [vmem:[%s3570_s0 + $0x2b0] sm:$0xff] }
 0x1aa   :  { %1363 = vst [vmem:[%s3573_s3 + $0x338] sm:$0xff] %v1258_v20  ;;  %v937_v50 = vmul.f32 %v1484_v17, %v2847_v31  ;;  %v1485_v20 = vld [vmem:[%s3570_s0 + $0x220] sm:$0xff]  ;;  %v1219_v45 = vmax.f32 %v1114_v40, 0.0  ;;  %v956_v5 = vmul.f32 %v1496_v49, %v2890_v48  ;;  %v1497_v63 = vld [vmem:[%s3570_s0 + $0x2b8] sm:$0xff] }
 0x1ab   :  { %1364 = vst.msk [vmem:[%s3573_s3 + $0x340] sm:$0xff] %vm124_vm0, %v1259_v27  ;;  %v938_v60 = vmul.f32 %v1485_v20, %v2847_v31  ;;  %v1116_v8 = vadd.f32 %v1023_v35, %v936_v59  ;;  %v1486_v27 = vld [vmem:[%s3570_s0 + $0x228] sm:$0xff]  ;;  %v1220_v34 = vmax.f32 %v1115_v53, 0.0  ;;  %v1498_v59 = vld [vmem:[%s3570_s0 + $0x2c0] sm:$0xff]  ;;  %v1500_v20 = vld [vmem:[%s3570_s0 + $0x2d0] sm:$0xff] }
 0x1ac   :  { %1302 = vst [vmem:[%s3573_s3 + $0x150] sm:$0xff] %v1197_v7  ;;  %v939_v4 = vmul.f32 %v1486_v27, %v2847_v31  ;;  %v1117_v54 = vadd.f32 %v1023_v35, %v937_v50  ;;  %v1487_v7 = vld [vmem:[%s3570_s0 + $0x230] sm:$0xff]  ;;  %v1488_v31 = vld [vmem:[%s3570_s0 + $0x238] sm:$0xff]  ;;  %v1499_v50 = vld [vmem:[%s3570_s0 + $0x2c8] sm:$0xff]  ;;  %v1043_v27 = vpop.permute.xlu0 %1042 }
 0x1ad   :  { %1303 = vst [vmem:[%s3573_s3 + $0x158] sm:$0xff] %v1198_v33  ;;  %v940_v23 = vmul.f32 %v1487_v7, %v2849_v3  ;;  %v1118_v55 = vadd.f32 %v1023_v35, %v938_v60  ;;  %v941_v1 = vmul.f32 %v1488_v31, %v2849_v3  ;;  %v1038_v19 = vpop.permute.xlu1 %1037  ;;  %v960_v60 = vmul.f32 %v1500_v20, %v2890_v48  ;;  %v1503_v31 = vld [vmem:[%s3570_s0 + $0x2e8] sm:$0xff] }
 0x1ae   :  { %1304 = vst [vmem:[%s3573_s3 + $0x160] sm:$0xff] %v1199_v32  ;;  %v1119_v33 = vadd.f32 %v1023_v35, %v939_v4  ;;  %v1221_v32 = vmax.f32 %v1116_v8, 0.0  ;;  %v1222_v44 = vmax.f32 %v1117_v54, 0.0  ;;  %v1494_v35 = vld [vmem:[%s3570_s0 + $0x2a0] sm:$0xff]  ;;  %v1136_v40 = vadd.f32 %v1038_v19, %v956_v5 }
 0x1af   :  { %1305 = vst [vmem:[%s3573_s3 + $0x168] sm:$0xff] %v1200_v25  ;;  %v1120_v14 = vadd.f32 %v1028_v51, %v940_v23  ;;  %v943_v25 = vmul.f32 %v1490_v15, %v2849_v3  ;;  %v1121_v62 = vadd.f32 %v1028_v51, %v941_v1  ;;  %v1223_v28 = vmax.f32 %v1118_v55, 0.0  ;;  %v1502_v23 = vld [vmem:[%s3570_s0 + $0x2e0] sm:$0xff]  ;;  %v1505_v15 = vld [vmem:[%s3570_s0 + $0x2f8] sm:$0xff] }
 0x1b0   :  { %1306 = vst [vmem:[%s3573_s3 + $0x170] sm:$0xff] %v1201_v13  ;;  %v944_v13 = vmul.f32 %v1491_v56, %v2849_v3  ;;  %v1224_v24 = vmax.f32 %v1119_v33, 0.0  ;;  %v954_v61 = vmul.f32 %v1494_v35, %v2890_v48  ;;  %v1241_v7 = vmax.f32 %v1136_v40, 0.0  ;;  %v1506_v56 = vld [vmem:[%s3570_s0 + $0x300] sm:$0xff] }
 0x1b1   :  { %1307 = vst [vmem:[%s3573_s3 + $0x178] sm:$0xff] %v1202_v12  ;;  %v945_v12 = vmul.f32 %v1492_v58, %v2849_v3  ;;  %v1123_v22 = vadd.f32 %v1028_v51, %v943_v25  ;;  %v1225_v39 = vmax.f32 %v1120_v14, 0.0  ;;  %v962_v55 = vmul.f32 %v1502_v23, %v2906_v21 }
 0x1b2   :  { %1308 = vst.msk [vmem:[%s3573_s3 + $0x180] sm:$0xff] %vm124_vm0, %v1203_v30  ;;  %v946_v30 = vmul.f32 %v1493_v46, %v2849_v3  ;;  %v1124_v37 = vadd.f32 %v1028_v51, %v944_v13  ;;  %v963_v1 = vmul.f32 %v1503_v31, %v2906_v21  ;;  %v965_v25 = vmul.f32 %v1505_v15, %v2906_v21 }
 0x1b3   :  { %1309 = vst [vmem:[%s3573_s3 + $0x188] sm:$0xff] %v1204_v16  ;;  %v1125_v43 = vadd.f32 %v1028_v51, %v945_v12  ;;  %v1226_v16 = vmax.f32 %v1121_v62, 0.0  ;;  %v1228_v10 = vmax.f32 %v1123_v22, 0.0  ;;  %v966_v13 = vmul.f32 %v1506_v56, %v2906_v21 }
 0x1b4   :  { %1310 = vst [vmem:[%s3573_s3 + $0x190] sm:$0xff] %v1205_v9  ;;  %v1126_v3 = vadd.f32 %v1028_v51, %v946_v30  ;;  %v955_v9 = vmul.f32 %v1495_v29, %v2890_v48  ;;  %v1229_v41 = vmax.f32 %v1124_v37, 0.0  ;;  %v967_v58 = vmul.f32 %v1507_v11, %v2906_v21 }
 0x1b5   :  { %1311 = vst [vmem:[%s3573_s3 + $0x198] sm:$0xff] %v1206_v26  ;;  %v1134_v26 = vadd.f32 %v1038_v19, %v954_v61  ;;  %v1230_v42 = vmax.f32 %v1125_v43, 0.0  ;;  %v1145_v12 = vadd.f32 %v1043_v27, %v965_v25  ;;  %v1146_v22 = vadd.f32 %v1043_v27, %v966_v13 }
 0x1b6   :  { %1312 = vst [vmem:[%s3573_s3 + $0x1a0] sm:$0xff] %v1207_v6  ;;  %v957_v6 = vmul.f32 %v1497_v63, %v2890_v48  ;;  %v1135_v57 = vadd.f32 %v1038_v19, %v955_v9  ;;  %v1231_v17 = vmax.f32 %v1126_v3, 0.0  ;;  %v1147_v30 = vadd.f32 %v1043_v27, %v967_v58 }
 0x1b7   :  { %1313 = vst [vmem:[%s3573_s3 + $0x1a8] sm:$0xff] %v1208_v36  ;;  %v958_v36 = vmul.f32 %v1498_v59, %v2890_v48  ;;  %v1239_v8 = vmax.f32 %v1134_v26, 0.0 }
 0x1b8   :  { %1314 = vst [vmem:[%s3573_s3 + $0x1b0] sm:$0xff] %v1209_v47  ;;  %v959_v47 = vmul.f32 %v1499_v50, %v2890_v48  ;;  %v1137_v53 = vadd.f32 %v1038_v19, %v957_v6  ;;  %v1240_v54 = vmax.f32 %v1135_v57, 0.0  ;;  %v1140_v48 = vadd.f32 %v1038_v19, %v960_v60 }
 0x1b9   :  { %1315 = vst.msk [vmem:[%s3573_s3 + $0x1b8] sm:$0xff] %vm124_vm0, %v1210_v0  ;;  %v1138_v0 = vadd.f32 %v1038_v19, %v958_v36  ;;  %v1252_v43 = vmax.f32 %v1147_v30, 0.0 }
 0x1ba   :  { %1323 = vst [vmem:[%s3573_s3 + $0x1f8] sm:$0xff] %v1218_v2  ;;  %v1139_v4 = vadd.f32 %v1038_v19, %v959_v47  ;;  %v1501_v2 = vld [vmem:[%s3570_s0 + $0x2d8] sm:$0xff]  ;;  %v1245_v62 = vmax.f32 %v1140_v48, 0.0  ;;  %v1251_v19 = vmax.f32 %v1146_v22, 0.0 }
 0x1bb   :  { %1324 = vst [vmem:[%s3573_s3 + $0x200] sm:$0xff] %v1219_v45  ;;  %v961_v51 = vmul.f32 %v1501_v2, %v2906_v21  ;;  %v1242_v45 = vmax.f32 %v1137_v53, 0.0 }
 0x1bc   :  { %1325 = vst [vmem:[%s3573_s3 + $0x208] sm:$0xff] %v1220_v34  ;;  %v1243_v34 = vmax.f32 %v1138_v0, 0.0  ;;  %v1244_v14 = vmax.f32 %v1139_v4, 0.0 }
 0x1bd   :  { %1326 = vst [vmem:[%s3573_s3 + $0x210] sm:$0xff] %v1221_v32  ;;  %v1141_v33 = vadd.f32 %v1043_v27, %v961_v51  ;;  %v1142_v32 = vadd.f32 %v1043_v27, %v962_v55 }
 0x1be   :  { %1327 = vst [vmem:[%s3573_s3 + $0x218] sm:$0xff] %v1222_v44  ;;  %v1143_v44 = vadd.f32 %v1043_v27, %v963_v1 }
 0x1bf   :  { %1328 = vst [vmem:[%s3573_s3 + $0x220] sm:$0xff] %v1223_v28  ;;  %v1144_v28 = vadd.f32 %v1043_v27, %v964_v18  ;;  %v1247_v46 = vmax.f32 %v1142_v32, 0.0 }
 0x1c0   :  { %1329 = vst.msk [vmem:[%s3573_s3 + $0x228] sm:$0xff] %vm124_vm0, %v1224_v24  ;;  %v1246_v24 = vmax.f32 %v1141_v33, 0.0  ;;  %v1248_v37 = vmax.f32 %v1143_v44, 0.0 }
 0x1c1   :  { %1330 = vst [vmem:[%s3573_s3 + $0x230] sm:$0xff] %v1225_v39  ;;  %v1249_v21 = vmax.f32 %v1144_v28, 0.0  ;;  %v1250_v39 = vmax.f32 %v1145_v12, 0.0 }
 0x1c2   :  { %1331 = vst [vmem:[%s3573_s3 + $0x238] sm:$0xff] %v1226_v16 }
 0x1c3   :  { %1332 = vst [vmem:[%s3573_s3 + $0x240] sm:$0xff] %v1227_v38 }
 0x1c4   :  { %1333 = vst [vmem:[%s3573_s3 + $0x248] sm:$0xff] %v1228_v10 }
 0x1c5   :  { %1334 = vst [vmem:[%s3573_s3 + $0x250] sm:$0xff] %v1229_v41 }
 0x1c6   :  { %1335 = vst [vmem:[%s3573_s3 + $0x258] sm:$0xff] %v1230_v42 }
 0x1c7   :  { %1336 = vst.msk [vmem:[%s3573_s3 + $0x260] sm:$0xff] %vm124_vm0, %v1231_v17 }
 0x1c8   :  { %1344 = vst [vmem:[%s3573_s3 + $0x2a0] sm:$0xff] %v1239_v8 }
 0x1c9   :  { %1345 = vst [vmem:[%s3573_s3 + $0x2a8] sm:$0xff] %v1240_v54 }
 0x1ca   :  { %1346 = vst [vmem:[%s3573_s3 + $0x2b0] sm:$0xff] %v1241_v7 }
 0x1cb   :  { %1347 = vst [vmem:[%s3573_s3 + $0x2b8] sm:$0xff] %v1242_v45 }
 0x1cc   :  { %1348 = vst [vmem:[%s3573_s3 + $0x2c0] sm:$0xff] %v1243_v34 }
 0x1cd   :  { %1349 = vst [vmem:[%s3573_s3 + $0x2c8] sm:$0xff] %v1244_v14 }
 0x1ce   :  { %1350 = vst.msk [vmem:[%s3573_s3 + $0x2d0] sm:$0xff] %vm124_vm0, %v1245_v62 }
 0x1cf   :  { %1351 = vst [vmem:[%s3573_s3 + $0x2d8] sm:$0xff] %v1246_v24 }
 0x1d0   :  { %1352 = vst [vmem:[%s3573_s3 + $0x2e0] sm:$0xff] %v1247_v46 }
 0x1d1   :  { %1353 = vst [vmem:[%s3573_s3 + $0x2e8] sm:$0xff] %v1248_v37 }
 0x1d2   :  { %1354 = vst [vmem:[%s3573_s3 + $0x2f0] sm:$0xff] %v1249_v21 }
 0x1d3   :  { %1355 = vst [vmem:[%s3573_s3 + $0x2f8] sm:$0xff] %v1250_v39 }
 0x1d4   :  { %1356 = vst [vmem:[%s3573_s3 + $0x300] sm:$0xff] %v1251_v19 }
 0x1d5   :  { %1357 = vst.msk [vmem:[%s3573_s3 + $0x308] sm:$0xff] %vm124_vm0, %v1252_v43 }

</bundles_post_ra>
